<compile_context>
chip_gen: v7x
topology: tpu7x:2x2x1
jax: 0.10.0
libtpu: 0.0.40
codegen_flags: <defaults>
</compile_context>

<pallas_src>
import jax
import jax.numpy as jnp
from jax.experimental import pallas as pl
from jax.experimental.pallas import tpu as pltpu


def _voxformer_head_kernel(meta_ref,            # SMEM int32 (1,): force_all flag (proposal.sum() < 2)
                           mask_ref,            # (1, TM)  f32   proposal values for this tile
                           q_ref,               # (D, TM)  bf16  voxel queries (feature-major)
                           wf_ref,              # (Dh+D, D) bf16 fused [w1^T ; w_seed^T]
                           w2t_ref,             # (D, Dh)  bf16  w2^T
                           bias_ref,            # (3*Dh + 2*D, 1) f32: [b1; ln_g; ln_b; b2; b_seed]
                           out_ref):            # (D, TM)  out_dtype
    """proposal>0 voxels get seed features (cross-attention stand-in);
    proposal==0 voxels get mlp_prior(queries).  If proposal.sum() < 2 the
    whole volume is treated as proposal>0 (PyTorch fallback path)."""
    Dh = w2t_ref.shape[1]
    D = out_ref.shape[0]

    force_all = meta_ref[0] > 0                          # proposal.sum() < 2 -> everything unmasked
    mask = mask_ref[...]                                 # (1, TM)
    all_unmasked = jnp.logical_or(force_all, jnp.min(mask) > 0.0)

    # ---- single fused MXU pass over the query block (bf16 operands, f32 accumulation).
    r = jnp.dot(wf_ref[...], q_ref[...], preferred_element_type=jnp.float32)  # (Dh+D, TM) f32

    # seed features for unmasked voxels.
    # TODO(synk): cross_transformer.get_vox_features (deformable cross-attention) is an
    # external module with no definition here; stand in with a per-voxel linear projection.
    b_seed = bias_ref[3 * Dh + D:3 * Dh + 2 * D, :]                           # (D, 1)
    seed = r[Dh:, :] + b_seed                                                 # (D, TM)

    @pl.when(all_unmasked)
    def _():
        out_ref[...] = seed.astype(out_ref.dtype)

    @pl.when(jnp.logical_not(all_unmasked))
    def _():
        # mlp_prior tail: LayerNorm (f32 stats, eps=1e-5) -> LeakyReLU(0.01) -> Linear
        b1 = bias_ref[0:Dh, :]
        g = bias_ref[Dh:2 * Dh, :]
        be = bias_ref[2 * Dh:3 * Dh, :]
        b2 = bias_ref[3 * Dh:3 * Dh + D, :]

        h = r[:Dh, :] + b1                                                    # (Dh, TM) f32
        mu = jnp.mean(h, axis=0, keepdims=True)
        var = jnp.mean(jnp.square(h - mu), axis=0, keepdims=True)
        hn = (h - mu) * jax.lax.rsqrt(var + 1e-5)
        hn = hn * g + be
        hn = jnp.where(hn >= 0, hn, 0.01 * hn)
        prior = jnp.dot(w2t_ref[...], hn.astype(jnp.bfloat16),
                        preferred_element_type=jnp.float32) + b2              # (D, TM)
        keep = mask > 0.0                                                     # (1, TM) -> bcast
        out_ref[...] = jnp.where(keep, seed, prior).astype(out_ref.dtype)


def _pick_tile_m(N):
    """Largest lane-dense tile (amortizes ~0.35us/step grid overhead) that keeps
    the grid long enough to shard across both v7x TensorCores."""
    candidates = (8192, 4096, 2048, 1024, 512, 256, 128)
    for min_grid in (4, 2, 1):
        for cand in candidates:
            if N % cand == 0 and N // cand >= min_grid:
                return cand
    return N


def voxformer_head_forward(mlvl_feats, proposal, lss_volume, params,
                           volume_h, volume_w, volume_z, embed_dims,
                           cam_params=None, img_metas=None,
                           tile_m=None, out_dtype=jnp.bfloat16):
    # mlvl_feats / cam_params / img_metas are only consumed by the external
    # cross_transformer (see TODO in the kernel).
    del mlvl_feats, cam_params, img_metas
    D = embed_dims
    Dh = D // 2
    N = volume_h * volume_w * volume_z

    if tile_m is None:
        tile_m = _pick_tile_m(N)
    tile_m = min(tile_m, N)
    # TODO(synk): ragged N (not a multiple of tile_m) would need padding of
    # queries/mask (padded columns flagged proposal>0 so they take the cheap seed path).
    assert N % tile_m == 0, "N must be divisible by tile_m"
    assert tile_m % 128 == 0, "tile_m must be a multiple of 128 (lane width)"
    grid_m = N // tile_m

    # lss_volume (1, D, H, W, Z) -> (D, N): pure reshape, no HBM transpose.
    # Stream in bf16: the kernel rounds q to bf16 for the MXU anyway, and halving
    # the HBM read bytes is ~the whole win on a bandwidth-bound kernel.
    queries = lss_volume.reshape(D, N).astype(jnp.bfloat16)

    # Proposal mask; the `proposal.sum() < 2` fallback flag goes to SMEM via
    # scalar prefetch (per-tile "all positive" is decided inside the kernel).
    prop_f = proposal.reshape(-1).astype(jnp.float32)
    force_all = (prop_f.sum() < 2.0).astype(jnp.int32).reshape(1)
    mask = prop_f.reshape(1, N)

    # Pre-pack weights once: fused [w1^T ; w_seed^T] (one MXU pass feeds both
    # branches) and w2^T in bf16; all biases/LN params in ONE (3*Dh+2*D, 1) f32
    # column sliced with static offsets in-kernel (one DMA instead of five).
    w1, b1 = params["w1"], params["b1"]
    g, be = params["ln_g"], params["ln_b"]
    w2, b2 = params["w2"], params["b2"]
    ws, bs = params["w_seed"], params["b_seed"]

    wf = jnp.concatenate([w1.T, ws.T], axis=0).astype(jnp.bfloat16)   # (Dh + D, D)
    w2t = w2.T.astype(jnp.bfloat16)                                   # (D, Dh)
    bias_col = jnp.concatenate(
        [b1.reshape(Dh), g.reshape(Dh), be.reshape(Dh),
         b2.reshape(D), bs.reshape(D)]).astype(jnp.float32).reshape(3 * Dh + 2 * D, 1)

    def full(shape):
        return pl.BlockSpec(shape, lambda i, meta_ref: (0, 0))

    out_dn = pl.pallas_call(
        _voxformer_head_kernel,
        out_shape=jax.ShapeDtypeStruct((D, N), out_dtype),
        grid_spec=pltpu.PrefetchScalarGridSpec(
            num_scalar_prefetch=1,
            grid=(grid_m,),
            in_specs=[
                pl.BlockSpec((1, tile_m), lambda i, meta_ref: (0, i)),   # proposal mask
                pl.BlockSpec((D, tile_m), lambda i, meta_ref: (0, i)),   # voxel queries (bf16)
                full((Dh + D, D)),        # fused [w1^T ; w_seed^T]  (bf16)
                full((D, Dh)),            # w2^T (bf16)
                full((3 * Dh + 2 * D, 1)),  # packed biases / LN params (f32)
            ],
            out_specs=pl.BlockSpec((D, tile_m), lambda i, meta_ref: (0, i)),
        ),
        compiler_params=pltpu.CompilerParams(
            dimension_semantics=("parallel",),
            # bf16 I/O keeps even tile_m=8192 well under every generation's scoped
            # VMEM (v5e 16MiB default, v7x 32MiB of 64MiB physical); 32MiB gives headroom.
            vmem_limit_bytes=32 * 1024 * 1024,
        ),
    )(force_all, mask, queries, wf, w2t, bias_col)

    # (D, N) -> (1, D, H, W, Z): pure reshape, no data movement.
    return out_dn.reshape(1, D, volume_h, volume_w, volume_z)


def make_buffers(volume_h, volume_w, volume_z, input_size):
    """Plain-JAX glue mirroring register_buffer contents (not on the hot path)."""
    xv, yv, zv = jnp.meshgrid(jnp.arange(volume_h), jnp.arange(volume_w),
                              jnp.arange(volume_z), indexing="ij")
    idx = jnp.arange(volume_h * volume_w * volume_z)
    vox_coords = jnp.concatenate(
        [xv.reshape(-1, 1), yv.reshape(-1, 1), zv.reshape(-1, 1), idx.reshape(-1, 1)], axis=-1)
    ref_3d = jnp.concatenate(
        [(xv.reshape(-1, 1) + 0.5) / volume_h,
         (yv.reshape(-1, 1) + 0.5) / volume_w,
         (zv.reshape(-1, 1) + 0.5) / volume_z], axis=-1)
    ogfH, ogfW = input_size
    xs = jnp.broadcast_to(jnp.linspace(0, ogfW - 1, ogfW)[None, None, :], (1, ogfH, ogfW))
    ys = jnp.broadcast_to(jnp.linspace(0, ogfH - 1, ogfH)[None, :, None], (1, ogfH, ogfW))
    image_grid = jnp.stack([xs, ys], axis=1)
    return image_grid, vox_coords, ref_3d


def _reference_forward(proposal, lss_volume, params, H, W, Z, D):
    """Pure-JAX f32 reference mirroring the PyTorch math (token-major layout)."""
    Dh = D // 2
    N = H * W * Z
    q = jnp.transpose(lss_volume.reshape(D, N))                       # (N, D)
    prop = proposal.reshape(-1).astype(jnp.float32)
    prop = jnp.where(prop.sum() < 2.0, jnp.ones_like(prop), prop)
    h = q @ params["w1"] + params["b1"].reshape(1, Dh)
    mu = jnp.mean(h, axis=-1, keepdims=True)
    var = jnp.mean(jnp.square(h - mu), axis=-1, keepdims=True)
    hn = (h - mu) * jax.lax.rsqrt(var + 1e-5)
    hn = hn * params["ln_g"].reshape(1, Dh) + params["ln_b"].reshape(1, Dh)
    hn = jnp.where(hn >= 0, hn, 0.01 * hn)
    prior = hn @ params["w2"] + params["b2"].reshape(1, D)
    seed = q @ params["w_seed"] + params["b_seed"].reshape(1, D)
    out = jnp.where(prop[:, None] > 0, seed, prior)                   # (N, D)
    return jnp.transpose(out).reshape(1, D, H, W, Z)


if __name__ == "__main__":
    # Small, module-consistent shapes (N = 2048 voxels -> auto tile_m = 512, grid = 4).
    volume_h, volume_w, volume_z = 16, 16, 8
    embed_dims = 128
    data_config = {"input_size": (16, 16)}
    Dh = embed_dims // 2
    N = volume_h * volume_w * volume_z
    tile_m = 512

    key = jax.random.PRNGKey(0)
    keys = jax.random.split(key, 12)

    params = {
        "w1":     0.05 * jax.random.normal(keys[0], (embed_dims, Dh), jnp.float32),
        "b1":     0.01 * jax.random.normal(keys[1], (Dh,), jnp.float32),
        "ln_g":   jnp.ones((Dh,), jnp.float32),
        "ln_b":   jnp.zeros((Dh,), jnp.float32),
        "w2":     0.05 * jax.random.normal(keys[2], (Dh, embed_dims), jnp.float32),
        "b2":     0.01 * jax.random.normal(keys[3], (embed_dims,), jnp.float32),
        "w_seed": 0.05 * jax.random.normal(keys[4], (embed_dims, embed_dims), jnp.float32),
        "b_seed": 0.01 * jax.random.normal(keys[5], (embed_dims,), jnp.float32),
    }

    # Inputs: mlvl_feats (B, N_cam, C, H, W), proposal (1, H, W, Z), lss_volume (1, D, H, W, Z)
    mlvl_feats = (jax.random.normal(keys[6], (1, 1, 32, 8, 8), jnp.float32),)
    prop_flat = (jax.random.uniform(keys[7], (N,)) > 0.5).astype(jnp.float32)
    prop_flat = prop_flat.at[:tile_m].set(1.0)   # first tile fully proposal>0 (exercises skip path)
    proposal = prop_flat.reshape(1, volume_h, volume_w, volume_z)
    lss_volume = jax.random.normal(keys[8], (1, embed_dims, volume_h, volume_w, volume_z),
                                   jnp.float32)

    # Buffers (kept for fidelity; only the external cross_transformer consumes them).
    _image_grid, _vox_coords, _ref_3d = make_buffers(
        volume_h, volume_w, volume_z, data_config["input_size"])

    out = voxformer_head_forward(
        mlvl_feats, proposal, lss_volume, params,
        volume_h=volume_h, volume_w=volume_w, volume_z=volume_z,
        embed_dims=embed_dims, tile_m=tile_m, out_dtype=jnp.bfloat16)
    out = jax.block_until_ready(out)

    assert out.shape == (1, embed_dims, volume_h, volume_w, volume_z)
    assert out.dtype == jnp.bfloat16

    # Correctness check against a pure-JAX f32 reference (tolerance covers bf16 I/O + matmuls).
    ref = _reference_forward(proposal, lss_volume, params,
                             volume_h, volume_w, volume_z, embed_dims)
    max_err = float(jnp.max(jnp.abs(out.astype(jnp.float32) - ref)))
    assert max_err < 0.1, f"max abs error {max_err} too large"

    print("KERNEL_OK")
</pallas_src>

<mosaic_0001>
module attributes {stable_mosaic.version = 11 : i64} {
  func.func @_voxformer_head_kernel(%arg0: i32, %arg1: memref<1xi32, #tpu.memory_space<smem>>, %arg2: memref<1x512xf32, #tpu.memory_space<vmem>>, %arg3: memref<128x512xbf16, #tpu.memory_space<vmem>>, %arg4: memref<192x128xbf16, #tpu.memory_space<vmem>>, %arg5: memref<128x64xbf16, #tpu.memory_space<vmem>>, %arg6: memref<448x1xf32, #tpu.memory_space<vmem>>, %arg7: memref<128x512xbf16, #tpu.memory_space<vmem>>) attributes {dimension_semantics = [#tpu.dimension_semantics<parallel>], iteration_bounds = array<i64: 4>, scalar_prefetch = 1 : i64, scratch_operands = 0 : i64, tpu.core_type = #tpu.core_type<tc>, window_params = [{transform_indices = @transform_0, window_bounds = array<i64: 1, 512>}, {transform_indices = @transform_1, window_bounds = array<i64: 128, 512>}, {pipeline_mode = #tpu.pipeline_mode<synchronous>, transform_indices = @transform_2, window_bounds = array<i64: 192, 128>}, {pipeline_mode = #tpu.pipeline_mode<synchronous>, transform_indices = @transform_3, window_bounds = array<i64: 128, 64>}, {pipeline_mode = #tpu.pipeline_mode<synchronous>, transform_indices = @transform_4, window_bounds = array<i64: 448, 1>}, {transform_indices = @transform_5, window_bounds = array<i64: 128, 512>}]} {
    %c0 = arith.constant 0 : index
    %0 = memref.load %arg1[%c0] : memref<1xi32, #tpu.memory_space<smem>>
    %c0_i32 = arith.constant 0 : i32
    %1 = arith.cmpi sgt, %0, %c0_i32 : i32
    %c0_0 = arith.constant 0 : index
    %c0_1 = arith.constant 0 : index
    %2 = vector.load %arg2[%c0_0, %c0_1] : memref<1x512xf32, #tpu.memory_space<vmem>>, vector<1x512xf32>
    %3 = vector.shape_cast %2 : vector<1x512xf32> to vector<1x1x512xf32>
    %cst = arith.constant dense<0x7F800000> : vector<1xf32>
    %4 = vector.multi_reduction <minimumf>, %3, %cst [1, 2] : vector<1x1x512xf32> to vector<1xf32>
    %5 = vector.shape_cast %4 : vector<1xf32> to vector<1x1x1xf32>
    %6 = vector.extract %5[0, 0, 0] : f32 from vector<1x1x1xf32>
    %cst_2 = arith.constant 0.000000e+00 : f32
    %7 = arith.cmpf ogt, %6, %cst_2 : f32
    %8 = arith.ori %1, %7 : i1
    %c0_3 = arith.constant 0 : index
    %c0_4 = arith.constant 0 : index
    %9 = vector.load %arg4[%c0_3, %c0_4] : memref<192x128xbf16, #tpu.memory_space<vmem>>, vector<192x128xbf16>
    %c0_5 = arith.constant 0 : index
    %c0_6 = arith.constant 0 : index
    %10 = vector.load %arg3[%c0_5, %c0_6] : memref<128x512xbf16, #tpu.memory_space<vmem>>, vector<128x512xbf16>
    %cst_7 = arith.constant dense<0.000000e+00> : vector<192x512xf32>
    %11 = tpu.matmul %9, %10, %cst_7 {dimension_numbers = #tpu.dot_dimension_numbers<[1], [0], [0], [1], [0, 0, 1, 1], [], []>} : vector<192x128xbf16>, vector<128x512xbf16>, vector<192x512xf32> -> vector<192x512xf32>
    %c320 = arith.constant 320 : index
    %c0_8 = arith.constant 0 : index
    %12 = vector.load %arg6[%c320, %c0_8] : memref<448x1xf32, #tpu.memory_space<vmem>>, vector<128x1xf32>
    %13 = vector.extract_strided_slice %11 {offsets = [64, 0], sizes = [128, 512], strides = [1, 1]} : vector<192x512xf32> to vector<128x512xf32>
    %14 = vector.broadcast %12 : vector<128x1xf32> to vector<128x512xf32>
    %15 = arith.addf %13, %14 : vector<128x512xf32>
    %16 = arith.extui %8 : i1 to i32
    %c0_i32_9 = arith.constant 0 : i32
    %17 = arith.cmpi ne, %16, %c0_i32_9 : i32
    scf.if %17 {
      %21 = arith.truncf %15 : vector<128x512xf32> to vector<128x512xbf16>
      %c0_11 = arith.constant 0 : index
      %c0_12 = arith.constant 0 : index
      %22 = vector.load %arg7[%c0_11, %c0_12] : memref<128x512xbf16, #tpu.memory_space<vmem>>, vector<128x512xbf16>
      tpu.vector_store %arg7[%c0_11, %c0_12], %21 {strides = array<i32>} : memref<128x512xbf16, #tpu.memory_space<vmem>>, vector<128x512xbf16>,
    } else {
    }
    %true = arith.constant true
    %18 = arith.xori %8, %true : i1
    %19 = arith.extui %18 : i1 to i32
    %c0_i32_10 = arith.constant 0 : i32
    %20 = arith.cmpi ne, %19, %c0_i32_10 : i32
    scf.if %20 {
      %c0_11 = arith.constant 0 : index
      %c0_12 = arith.constant 0 : index
      %21 = vector.load %arg6[%c0_11, %c0_12] : memref<448x1xf32, #tpu.memory_space<vmem>>, vector<64x1xf32>
      %c64 = arith.constant 64 : index
      %c0_13 = arith.constant 0 : index
      %22 = vector.load %arg6[%c64, %c0_13] : memref<448x1xf32, #tpu.memory_space<vmem>>, vector<64x1xf32>
      %c128 = arith.constant 128 : index
      %c0_14 = arith.constant 0 : index
      %23 = vector.load %arg6[%c128, %c0_14] : memref<448x1xf32, #tpu.memory_space<vmem>>, vector<64x1xf32>
      %c192 = arith.constant 192 : index
      %c0_15 = arith.constant 0 : index
      %24 = vector.load %arg6[%c192, %c0_15] : memref<448x1xf32, #tpu.memory_space<vmem>>, vector<128x1xf32>
      %25 = vector.extract_strided_slice %11 {offsets = [0, 0], sizes = [64, 512], strides = [1, 1]} : vector<192x512xf32> to vector<64x512xf32>
      %26 = vector.broadcast %21 : vector<64x1xf32> to vector<64x512xf32>
      %27 = arith.addf %25, %26 : vector<64x512xf32>
      %cst_16 = arith.constant dense<0.000000e+00> : vector<512xf32>
      %28 = vector.multi_reduction <add>, %27, %cst_16 [0] : vector<64x512xf32> to vector<512xf32>
      %29 = vector.shape_cast %28 : vector<512xf32> to vector<1x512xf32>
      %cst_17 = arith.constant 6.400000e+01 : f32
      %30 = vector.broadcast %cst_17 : f32 to vector<1x512xf32>
      %31 = arith.divf %29, %30 : vector<1x512xf32>
      %32 = vector.broadcast %31 : vector<1x512xf32> to vector<64x512xf32>
      %33 = arith.subf %27, %32 : vector<64x512xf32>
      %34 = arith.mulf %33, %33 : vector<64x512xf32>
      %cst_18 = arith.constant dense<0.000000e+00> : vector<512xf32>
      %35 = vector.multi_reduction <add>, %34, %cst_18 [0] : vector<64x512xf32> to vector<512xf32>
      %36 = vector.shape_cast %35 : vector<512xf32> to vector<1x512xf32>
      %cst_19 = arith.constant 6.400000e+01 : f32
      %37 = vector.broadcast %cst_19 : f32 to vector<1x512xf32>
      %38 = arith.divf %36, %37 : vector<1x512xf32>
      %39 = vector.broadcast %31 : vector<1x512xf32> to vector<64x512xf32>
      %40 = arith.subf %27, %39 : vector<64x512xf32>
      %cst_20 = arith.constant 9.99999974E-6 : f32
      %41 = vector.broadcast %cst_20 : f32 to vector<1x512xf32>
      %42 = arith.addf %38, %41 : vector<1x512xf32>
      %43 = math.rsqrt %42 : vector<1x512xf32>
      %44 = vector.broadcast %43 : vector<1x512xf32> to vector<64x512xf32>
      %45 = arith.mulf %40, %44 : vector<64x512xf32>
      %46 = vector.broadcast %22 : vector<64x1xf32> to vector<64x512xf32>
      %47 = arith.mulf %45, %46 : vector<64x512xf32>
      %48 = vector.broadcast %23 : vector<64x1xf32> to vector<64x512xf32>
      %49 = arith.addf %47, %48 : vector<64x512xf32>
      %cst_21 = arith.constant 0.000000e+00 : f32
      %50 = vector.broadcast %cst_21 : f32 to vector<64x512xf32>
      %51 = arith.cmpf oge, %49, %50 : vector<64x512xf32>
      %cst_22 = arith.constant 0.00999999977 : f32
      %52 = vector.broadcast %cst_22 : f32 to vector<64x512xf32>
      %53 = arith.mulf %52, %49 : vector<64x512xf32>
      %54 = arith.select %51, %49, %53 : vector<64x512xi1>, vector<64x512xf32>
      %c0_23 = arith.constant 0 : index
      %c0_24 = arith.constant 0 : index
      %55 = vector.load %arg5[%c0_23, %c0_24] : memref<128x64xbf16, #tpu.memory_space<vmem>>, vector<128x64xbf16>
      %56 = arith.truncf %54 : vector<64x512xf32> to vector<64x512xbf16>
      %cst_25 = arith.constant dense<0.000000e+00> : vector<128x512xf32>
      %57 = tpu.matmul %55, %56, %cst_25 {dimension_numbers = #tpu.dot_dimension_numbers<[1], [0], [0], [1], [0, 0, 1, 1], [], []>} : vector<128x64xbf16>, vector<64x512xbf16>, vector<128x512xf32> -> vector<128x512xf32>
      %58 = vector.broadcast %24 : vector<128x1xf32> to vector<128x512xf32>
      %59 = arith.addf %57, %58 : vector<128x512xf32>
      %cst_26 = arith.constant 0.000000e+00 : f32
      %60 = vector.broadcast %cst_26 : f32 to vector<1x512xf32>
      %61 = arith.cmpf ogt, %2, %60 : vector<1x512xf32>
      %62 = vector.shape_cast %61 : vector<1x512xi1> to vector<1x512xi1>
      %63 = vector.broadcast %62 : vector<1x512xi1> to vector<128x512xi1>
      %64 = arith.select %63, %15, %59 : vector<128x512xi1>, vector<128x512xf32>
      %65 = arith.truncf %64 : vector<128x512xf32> to vector<128x512xbf16>
      %c0_27 = arith.constant 0 : index
      %c0_28 = arith.constant 0 : index
      %66 = vector.load %arg7[%c0_27, %c0_28] : memref<128x512xbf16, #tpu.memory_space<vmem>>, vector<128x512xbf16>
      tpu.vector_store %arg7[%c0_27, %c0_28], %65 {strides = array<i32>} : memref<128x512xbf16, #tpu.memory_space<vmem>>, vector<128x512xbf16>,
    } else {
    }
    return
  }
  func.func @transform_0(%arg0: i32, %arg1: memref<1xi32, #tpu.memory_space<smem>>) -> (i32, i32) {
    %c0_i32 = arith.constant 0 : i32
    %c0_i32_0 = arith.constant 0 : i32
    return %c0_i32, %arg0 : i32, i32
  }
  func.func @transform_1(%arg0: i32, %arg1: memref<1xi32, #tpu.memory_space<smem>>) -> (i32, i32) {
    %c0_i32 = arith.constant 0 : i32
    %c0_i32_0 = arith.constant 0 : i32
    return %c0_i32, %arg0 : i32, i32
  }
  func.func @transform_2(%arg0: i32, %arg1: memref<1xi32, #tpu.memory_space<smem>>) -> (i32, i32) {
    %c0_i32 = arith.constant 0 : i32
    %c0_i32_0 = arith.constant 0 : i32
    %c0_i32_1 = arith.constant 0 : i32
    return %c0_i32, %c0_i32_0 : i32, i32
  }
  func.func @transform_3(%arg0: i32, %arg1: memref<1xi32, #tpu.memory_space<smem>>) -> (i32, i32) {
    %c0_i32 = arith.constant 0 : i32
    %c0_i32_0 = arith.constant 0 : i32
    %c0_i32_1 = arith.constant 0 : i32
    return %c0_i32, %c0_i32_0 : i32, i32
  }
  func.func @transform_4(%arg0: i32, %arg1: memref<1xi32, #tpu.memory_space<smem>>) -> (i32, i32) {
    %c0_i32 = arith.constant 0 : i32
    %c0_i32_0 = arith.constant 0 : i32
    %c0_i32_1 = arith.constant 0 : i32
    return %c0_i32, %c0_i32_0 : i32, i32
  }
  func.func @transform_5(%arg0: i32, %arg1: memref<1xi32, #tpu.memory_space<smem>>) -> (i32, i32) {
    %c0_i32 = arith.constant 0 : i32
    %c0_i32_0 = arith.constant 0 : i32
    return %c0_i32, %arg0 : i32, i32
  }
}

</mosaic_0001>

<bundles_post_ra>
// kernel: tpu_custom_call.1
= control target key start
LH: loop header
LB: loop body
LE: loop exit
PB: predicated region body
PF: predicated region fallthrough
CT: control target
= control target key end

     0   :  { %s4728_s0 = inlined_call_operand.<no memory space> [shape: s32[1], index: 0, kind: input, shape index: {}]   ;;  %s4729_s1 = inlined_call_operand.vmem [shape: f32[1,2048], index: 1, kind: input, shape index: {}]   ;;  %s4730_s2 = inlined_call_operand.hbm [shape: bf16[128,2048], index: 2, kind: input, shape index: {}]   ;;  %s4731_s3 = inlined_call_operand.vmem [shape: bf16[192,128], index: 3, kind: input, shape index: {}]   ;;  %s4732_s4 = inlined_call_operand.vmem [shape: bf16[128,64], index: 4, kind: input, shape index: {}]   ;;  %s4733_s5 = inlined_call_operand.vmem [shape: f32[448,1], index: 5, kind: input, shape index: {}]   ;;  %s4734_s6 = inlined_call_operand.hbm [shape: bf16[128,2048], index: 6, kind: output, shape index: {}]  }
   0x1   :  { %11 = sst [smem:[#allocation3]] %s4728_s0 }
   0x2   :  { %12 = vsyncpa [#allocation5], 0 }
   0x3   :  { %14 = vsyncpa [#allocation5 + $0x1], 0 }
   0x4   :  { %15 = vsyncpa [#allocation6], 0 }
   0x5   :  { %17 = vsyncpa [#allocation6 + $0x1], 0  ;;  %s3167_s23 = smov 0   ;;  %s3169_s24 = smov 0  }
   0x6   :  { %s3171_s25 = smov 0   ;;  %s3173_s26 = smov 0  }
   0x7 LB: > { %s3188_s0 = sadd.s32 4294967295, %s3117_s26   ;;  %s2672_s27 = sadd.s32 4294967294, %s3117_s26   ;;  %s3117_s26 = sphi %s3173_s26, %s5022_s26   ;;  %s3113_s25 = sphi %s3171_s25, %s5021_s25   ;;  %s3109_s24 = sphi %s3169_s24, %s5020_s24   ;;  %s3105_s23 = sphi %s3167_s23, %s5019_s23  }
   0x8   : > { %s3192_s28 = sadd.s32 1, %s3117_s26   ;;  %s56_s29 = sadd.s32 1, %s3113_s25 }
   0x9   : > { %s53_s30 = ssub.s32 %s3117_s26, %s3192_s28  ;;  %p63_p0 = scmp.ne.s32.totalorder %s3113_s25, %s3109_s24 }
   0xa   : > { %p54_p1 = scmp.eq.s32.totalorder %s53_s30, 0  ;;  %p64_p2 = scmp.eq.s32.totalorder %s3117_s26, 0 }
   0xb   : > { %p69_p3 = scmp.ne.s32.totalorder %s3109_s24, %s3105_s23  ;;  %p70_p4 = scmp.eq.s32.totalorder %s3188_s0, 0 }
   0xc   : > { %s3204_s7 = scalar_select %p54_p1, %s3113_s25, %s56_s29  }
   0xd   : > { %p3206_p5 = por %p64_p2, %p63_p0  ;;  %p3210_p6 = por %p70_p4, %p69_p3 }
   0xe   : > { %p156_p7 = scmp.eq.s32.totalorder %s3188_s0, 3  ;;  %p162_p8 = scmp.eq.s32.totalorder %s2672_s27, 3 }
   0xf   : > { %p2899_p9 = scmp.lt.s32.totalorder %s3117_s26, 4  ;;  %s199_s12 = sand.u32 1, %s3113_s25  }
  0x10   : > { %p3216_p10 = por %p156_p7, %p63_p0  ;;  %p3220_p11 = por %p162_p8, %p69_p3 }
  0x11   : > { %s2819_s13 = sshll.u32 %s3117_s26, 8  ;;  %s2675_s14 = sshll.u32 %s199_s12, 8 }
  0x12   : > { %s4802_s10 = scalar_select %p3216_p10, 1, 0 }
  0x13   : > { %s4803_s11 = scalar_select %p3220_p11, 1, 0 }
  0x14   : > { %s3229_s17 = scalar_lea.hbm %s4730_s2, %s2819_s13  ;;  %s203_s18 = scalar_lea.vmem [#allocation4], %s2675_s14 }
  0x15   : > { %s210_s19 = sshll.u32 %s203_s18, 4  ;;  %p3233_p12 = pnand %p2899_p9, %p3206_p5  ;;  %s3237_s19 = int_to_ptr.vmem [resolvable:$true] %s210_s19 }
  0x16   : > { %s3240_s21 = scalar_lea.sflag [#allocation5], %s199_s12  ;;  %s3021_s22 = scalar_lea.hbm %s3229_s17, 4096 }
  0x17   : > { %p3022_p0 = scmp.ne.s32.totalorder %s3229_s17, %s3021_s22  ;;  %p3023_p1 = pneg %p3233_p12 }
  0x18   : > { %s3026_s30 = scalar_lea.hbm %s4730_s2, 16384  ;;  %p3027_p4 = scmp.lt.u32.totalorder %s3229_s17, %s4730_s2 }
  0x19   : > { %p3024_p2 = pnand %p3023_p1, %p3022_p0  ;;  %p3028_p5 = scmp.lt.u32.totalorder %s3026_s30, %s3021_s22 }
  0x1a   : > { %p3030_p8 = scmp.lt.u32.totalorder %s3021_s22, %s3229_s17 }
  0x1b   : > { %p3025_p3 = pneg %p3024_p2  ;;  %p3029_p7 = por %p3028_p5, %p3027_p4 }
  0x1d   : > { %p3031_p9 = por %p3030_p8, %p3029_p7 }
  0x1f   : > { %p3032_p13 = pnand %p3031_p9, %p3025_p3 }
  0x21   : > { %3035 = shalt.err (!%p3032_p13)
}
  0x22   : > { %s3036_s12 = scalar_lea.vmem %s3237_s19, 4096  ;;  %s3119_s14 = smov [#allocation4]  }
  0x23   : > { %p3037_p0 = scmp.ne.s32.totalorder %s3237_s19, %s3036_s12  ;;  %s3041_s15 = sshll.u32 %s3119_s14, 4  ;;  %s3042_s15 = int_to_ptr.vmem [resolvable:$false] %s3041_s15 }
  0x24   : > { %s3043_s16 = scalar_lea.vmem %s3042_s15, 8192  ;;  %p3044_p10 = scmp.lt.s32.totalorder %s3237_s19, %s3042_s15 }
  0x25   : > { %p3039_p2 = pnand %p3037_p0, %p3023_p1  ;;  %p3045_p4 = scmp.lt.s32.totalorder %s3043_s16, %s3036_s12 }
  0x27   : > { %p3040_p11 = pneg %p3039_p2  ;;  %p3046_p5 = por %p3045_p4, %p3044_p10 }
  0x29   : > { %p3047_p7 = pnand %p3046_p5, %p3040_p11 }
  0x2b   : > { %3050 = shalt.err (!%p3047_p7)
}
  0x2c   : > { %s3120_s18 = smov 1024   ;;  %s3121_s22 = smov 256  }
  0x2d   : > { %s3122_s27 = smov 16   ;;  %p218_p13 = scmp.lt.s32.totalorder %s3117_s26, 5 }
  0x2e   : > { %2894 = dma.hbm_to_vmem [thread:$0]  (!%p3233_p12), %s3229_s17, 4096, %s3237_s19, %s3240_s21, %s3120_s18, %s3121_s22, %s3122_s27  }
  0x2f   : > { %p4805_p1 = scmp.ge.s32.totalorder %s3117_s26, 1 }
  0x31   : > { %p219_p3 = pnand %p4805_p1, %p218_p13 }
  0x33   : > { %222 = sbr.rel (%p219_p3) target bundleno = 997 (0x3e5), region = 40 }
  0x3a   : > { %s3272_s29 = sand.u32 1, %s3109_s24  }
  0x3b   : > { %s2679_s30 = sshll.u32 %s3272_s29, 8  ;;  %s225_s8 = scalar_lea.sflag [#allocation5], %s3272_s29 }
  0x3c   : > { %s3278_s13 = scalar_lea.vmem [#allocation4], %s2679_s30 }
  0x3d   : > { %3096 = dma.done.wait (%p3210_p6), %s225_s8, 4096  }
  0x3e   : > { %3098 = vsyncadd (%p3210_p6), %s225_s8, 4294963200  ;;  %v3123_v0 = vmov 0   ;;  %v2943_v1 = vld [vmem:[%s3278_s13 + $0x4] ss:$16 sps:$4 sm:$0xff]   ;;  %v2945_v2 = vld [vmem:[%s3278_s13 + $0xc] ss:$16 sps:$4 sm:$0xff]   ;;  %v271_v28 = vlaneseq }
  0x3f   : > { %630 = vmatprep.mubr.bf16.mxu0 %v3123_v0  ;;  %783 = vmatprep.mubr.bf16.mxu1 %v3123_v0  ;;  %v2947_v3 = vld [vmem:[%s3278_s13] ss:$16 sps:$4 sm:$0xff]   ;;  %v2948_v4 = vld [vmem:[%s3278_s13 + $0x8] ss:$16 sps:$4 sm:$0xff]   ;;  %v2949_v5 = vld [vmem:[%s3278_s13 + $0x24] ss:$16 sps:$4 sm:$0xff]  }
  0x40   : > { %2942 = vset.pattern.permute.xlu1 %v3123_v0  ;;  %2941 = vset.pattern.permute.xlu0 %v3123_v0  ;;  %v2951_v6 = vld [vmem:[%s3278_s13 + $0x2c] ss:$16 sps:$4 sm:$0xff]   ;;  %v2953_v7 = vld [vmem:[%s3278_s13 + $0x20] ss:$16 sps:$4 sm:$0xff]   ;;  %v2954_v8 = vld [vmem:[%s3278_s13 + $0x28] ss:$16 sps:$4 sm:$0xff]  }
  0x41   : > { %598 = vmatprep.subr.bf16.mxu0 %v2943_v1  ;;  %751 = vmatprep.subr.bf16.mxu1 %v2945_v2  ;;  %v2955_v9 = vld [vmem:[%s3278_s13 + $0x44] ss:$16 sps:$4 sm:$0xff]   ;;  %v2957_v10 = vld [vmem:[%s3278_s13 + $0x4c] ss:$16 sps:$4 sm:$0xff]   ;;  %v2959_v11 = vld [vmem:[%s3278_s13 + $0x40] ss:$16 sps:$4 sm:$0xff]  }
  0x42   : > { %599 = vmatpush1.bf16.msra.mxu0 %v2947_v3  ;;  %752 = vmatpush1.bf16.msra.mxu1 %v2948_v4  ;;  %v2960_v12 = vld [vmem:[%s3278_s13 + $0x48] ss:$16 sps:$4 sm:$0xff]   ;;  %v2961_v13 = vld [vmem:[%s3278_s13 + $0x64] ss:$16 sps:$4 sm:$0xff]   ;;  %v2963_v14 = vld [vmem:[%s3278_s13 + $0x6c] ss:$16 sps:$4 sm:$0xff]  }
  0x43   : > { %600 = vmatprep.subr.bf16.mxu0 %v2949_v5  ;;  %753 = vmatprep.subr.bf16.mxu1 %v2951_v6  ;;  %v2965_v15 = vld [vmem:[%s3278_s13 + $0x60] ss:$16 sps:$4 sm:$0xff]   ;;  %v2966_v16 = vld [vmem:[%s3278_s13 + $0x68] ss:$16 sps:$4 sm:$0xff]   ;;  %v2967_v17 = vld [vmem:[%s3278_s13 + $0x84] ss:$16 sps:$4 sm:$0xff]  }
  0x44   : > { %v2969_v18 = vld [vmem:[%s3278_s13 + $0x8c] ss:$16 sps:$4 sm:$0xff]   ;;  %v2971_v19 = vld [vmem:[%s3278_s13 + $0x80] ss:$16 sps:$4 sm:$0xff]   ;;  %v2972_v20 = vld [vmem:[%s3278_s13 + $0x88] ss:$16 sps:$4 sm:$0xff]  }
  0x45   : > { %v2973_v21 = vld [vmem:[%s3278_s13 + $0xa4] ss:$16 sps:$4 sm:$0xff]   ;;  %v2975_v22 = vld [vmem:[%s3278_s13 + $0xac] ss:$16 sps:$4 sm:$0xff]   ;;  %s2681_s9 = sshll.u32 %s3188_s0, 2  ;;  %v3319_v32 = vshrl.u32 %v271_v28, 7 }
  0x46   : > { %601 = vmatpush1.bf16.msra.mxu0 %v2953_v7  ;;  %754 = vmatpush1.bf16.msra.mxu1 %v2954_v8  ;;  %v2977_v23 = vld [vmem:[%s3278_s13 + $0xa0] ss:$16 sps:$4 sm:$0xff]   ;;  %v2978_v24 = vld [vmem:[%s3278_s13 + $0xa8] ss:$16 sps:$4 sm:$0xff]   ;;  %v2979_v25 = vld [vmem:[%s3278_s13 + $0xc4] ss:$16 sps:$4 sm:$0xff]  }
  0x47   : > { %602 = vmatprep.subr.bf16.mxu0 %v2955_v9  ;;  %755 = vmatprep.subr.bf16.mxu1 %v2957_v10  ;;  %p260_p6 = scmp.lt.s32.totalorder %s2681_s9, 15  ;;  %v2981_v26 = vld [vmem:[%s3278_s13 + $0xcc] ss:$16 sps:$4 sm:$0xff]   ;;  %v2983_v27 = vld [vmem:[%s3278_s13 + $0xc0] ss:$16 sps:$4 sm:$0xff]   ;;  %4806 = vst [vmem:[#allocation10_spill] sm:$0xff] %v3319_v32 }
  0x48   : > { %v2984_v29 = vld [vmem:[%s3278_s13 + $0xc8] ss:$16 sps:$4 sm:$0xff]   ;;  %v2985_v30 = vld [vmem:[%s3278_s13 + $0xe4] ss:$16 sps:$4 sm:$0xff]   ;;  %v2987_v31 = vld [vmem:[%s3278_s13 + $0xec] ss:$16 sps:$4 sm:$0xff]  }
  0x49   : > { %s5024_s9 = smov (!%p260_p6, %s2681_s9), 15  ;;  %v2989_v33 = vld [vmem:[%s3278_s13 + $0xe0] ss:$16 sps:$4 sm:$0xff]   ;;  %v2990_v34 = vld [vmem:[%s3278_s13 + $0xe8] ss:$16 sps:$4 sm:$0xff]   ;;  %v4739_v35 = vsub.s32 0, %v3319_v32 }
  0x4a   : > { %603 = vmatpush1.bf16.msra.mxu0 %v2959_v11  ;;  %756 = vmatpush1.bf16.msra.mxu1 %v2960_v12  ;;  %v2991_v36 = vld [vmem:[%s4731_s3] sm:$0xff]   ;;  %v905_v37 = vld [vmem:[%s4733_s5 + $0x148] sm:$0xff]  ;;  %s262_s15 = scalar_lea.vmem %s4729_s1, %s5024_s9  ;;  %v4738_v38 = vsub.s32 1, %v3319_v32  ;;  %v4737_v39 = vsub.s32 2, %v3319_v32  ;;  %v4736_v40 = vsub.s32 3, %v3319_v32  ;;  %v906_v41 = vld [vmem:[%s4733_s5 + $0x150] sm:$0xff] }
  0x4b   : > { %604 = vmatprep.subr.bf16.mxu0 %v2961_v13  ;;  %757 = vmatprep.subr.bf16.mxu1 %v2963_v14  ;;  %v3339_v42 = vld [vmem:[%s262_s15] sm:$0xf]  ;;  %vm291_vm0 = vcmask 1040384   ;;  %v907_v50 = vld [vmem:[%s4733_s5 + $0x158] sm:$0xff]  ;;  %v2992_v53 = vld [vmem:[%s4731_s3 + $0x8] sm:$0xff]   ;;  %s267_s21 = sld [smem:[#allocation3]] }
  0x4c   : > { %927 = vperm.xlu1 %2942, %v905_v37   ;;  %4807 = vst [vmem:[#allocation11_spill] sm:$0xff] %v3339_v42  ;;  %v274_v43 = vrot.slane %v3339_v42, %v4739_v35  ;;  %v278_v44 = vrot.slane %v3339_v42, %v4738_v38  ;;  %v282_v45 = vrot.slane %v3339_v42, %v4737_v39  ;;  %v908_v56 = vld [vmem:[%s4733_s5 + $0x160] sm:$0xff]  ;;  %v909_v57 = vld [vmem:[%s4733_s5 + $0x168] sm:$0xff]  ;;  %v2993_v58 = vld [vmem:[%s4731_s3 + $0x10] sm:$0xff]   ;;  %s3654_s15 = scalar_lea.vmem [#allocation7], %s2679_s30 }
  0x4d   : > { %v286_v46 = vrot.slane %v3339_v42, %v4736_v40  ;;  %v910_v59 = vld [vmem:[%s4733_s5 + $0x170] sm:$0xff]  ;;  %v911_v60 = vld [vmem:[%s4733_s5 + $0x178] sm:$0xff]  ;;  %v912_v62 = vld [vmem:[%s4733_s5 + $0x180] sm:$0xff] }
  0x4e   : > { %605 = vmatpush1.bf16.msra.mxu0 %v2965_v15  ;;  %758 = vmatpush1.bf16.msra.mxu1 %v2966_v16  ;;  %v292_v47 = vsel %vm291_vm0, %v274_v43, inf  ;;  %v293_v48 = vsel %vm291_vm0, %v278_v44, inf  ;;  %v294_v49 = vsel %vm291_vm0, %v282_v45, inf  ;;  %v2994_v61 = vld [vmem:[%s4731_s3 + $0x18] sm:$0xff]   ;;  %v913_v63 = vld [vmem:[%s4733_s5 + $0x188] sm:$0xff]  ;;  %v2995_v1 = vld [vmem:[%s4731_s3 + $0x20] sm:$0xff]  }
  0x4f   : > { %606 = vmatprep.subr.bf16.mxu0 %v2967_v17  ;;  %759 = vmatprep.subr.bf16.mxu1 %v2969_v18  ;;  %v295_v51 = vsel %vm291_vm0, %v286_v46, inf  ;;  %v296_v52 = vmin.f32 %v292_v47, %v293_v48  ;;  %v914_v2 = vld [vmem:[%s4733_s5 + $0x190] sm:$0xff]  ;;  %v904_v3 = vld [vmem:[%s4733_s5 + $0x140] sm:$0xff]  ;;  %v915_v4 = vld [vmem:[%s4733_s5 + $0x198] sm:$0xff] }
  0x50   : > { %932 = vperm.xlu1 %2942, %v906_v41   ;;  %v297_v54 = vmin.f32 %v294_v49, %v295_v51  ;;  %v917_v5 = vld [vmem:[%s4733_s5 + $0x1a8] sm:$0xff]  ;;  %v916_v7 = vld [vmem:[%s4733_s5 + $0x1a0] sm:$0xff]  ;;  %v919_v8 = vld [vmem:[%s4733_s5 + $0x1b8] sm:$0xff] }
  0x51   : > { %v2996_v6 = vld [vmem:[%s4731_s3 + $0x28] sm:$0xff]   ;;  %v918_v9 = vld [vmem:[%s4733_s5 + $0x1b0] sm:$0xff]  ;;  %v2998_v11 = vld [vmem:[%s4731_s3 + $0x38] sm:$0xff]   ;;  %p268_p10 = scmp.gt.s32.totalorder %s267_s21, 0 }
  0x52   : > { %607 = vmatpush1.bf16.msra.mxu0 %v2971_v19  ;;  %760 = vmatpush1.bf16.msra.mxu1 %v2972_v20  ;;  %v298_v55 = vmin.f32 %v296_v52, %v297_v54  ;;  %v2997_v10 = vld [vmem:[%s4731_s3 + $0x30] sm:$0xff]   ;;  %v2999_v12 = vld [vmem:[%s4731_s3 + $0x40] sm:$0xff]   ;;  %v3000_v13 = vld [vmem:[%s4731_s3 + $0x48] sm:$0xff]  }
  0x53   : > { %608 = vmatprep.subr.bf16.mxu0 %v2973_v21  ;;  %761 = vmatprep.subr.bf16.mxu1 %v2975_v22  ;;  %v3001_v14 = vld [vmem:[%s4731_s3 + $0x50] sm:$0xff]   ;;  %v3002_v15 = vld [vmem:[%s4731_s3 + $0x58] sm:$0xff]  }
  0x54   : > { %937 = vperm.xlu1 %2942, %v907_v50   ;;  %299 = vmin.xlane.f32.xlu0 %v298_v55 }
  0x56   : > { %609 = vmatpush1.bf16.msra.mxu0 %v2977_v23  ;;  %762 = vmatpush1.bf16.msra.mxu1 %v2978_v24 }
  0x57   : > { %610 = vmatprep.subr.bf16.mxu0 %v2979_v25  ;;  %763 = vmatprep.subr.bf16.mxu1 %v2981_v26 }
  0x58   : > { %942 = vperm.xlu1 %2942, %v908_v56  }
  0x5a   : > { %611 = vmatpush1.bf16.msra.mxu0 %v2983_v27  ;;  %764 = vmatpush1.bf16.msra.mxu1 %v2984_v29 }
  0x5b   : > { %612 = vmatprep.subr.bf16.mxu0 %v2985_v30  ;;  %765 = vmatprep.subr.bf16.mxu1 %v2987_v31 }
  0x5c   : > { %947 = vperm.xlu1 %2942, %v909_v57  }
  0x5e   : > { %613 = vmatpush1.bf16.msra.mxu0 %v2989_v33  ;;  %766 = vmatpush1.bf16.msra.mxu1 %v2990_v34 }
  0x60   : > { %952 = vperm.xlu1 %2942, %v910_v59  }
  0x61   : > { %631 = vmatmul.mubr.bf16.vlgmr.msra.gmra.mrb[0].mxu0 %v2991_v36  ;;  %784 = vmatmul.mubr.bf16.vlgmr.msra.gmra.mrb[0].mxu1 %v2991_v36 }
  0x62   : > { %640 = vmatprep.mubr.bf16.mxu0 %v3123_v0  ;;  %793 = vmatprep.mubr.bf16.mxu1 %v3123_v0 }
  0x64   : > { %957 = vperm.xlu1 %2942, %v911_v60  }
  0x68   : > { %962 = vperm.xlu1 %2942, %v912_v62  }
  0x69   : > { %641 = vmatmul.mubr.bf16.gmra.mrb[4].mxu0 %v2992_v53  ;;  %794 = vmatmul.mubr.bf16.gmra.mrb[4].mxu1 %v2992_v53 }
  0x6a   : > { %650 = vmatprep.mubr.bf16.mxu0 %v3123_v0  ;;  %803 = vmatprep.mubr.bf16.mxu1 %v3123_v0 }
  0x6b   : > { %922 = vperm.xlu0 %2941, %v904_v3  }
  0x6c   : > { %967 = vperm.xlu1 %2942, %v913_v63  }
  0x6f   : > { %987 = vperm.xlu0 %2941, %v917_v5  }
  0x70   : > { %972 = vperm.xlu1 %2942, %v914_v2  }
  0x71   : > { %651 = vmatmul.mubr.bf16.gmra.mrb[8].mxu0 %v2993_v58  ;;  %804 = vmatmul.mubr.bf16.gmra.mrb[8].mxu1 %v2993_v58 }
  0x72   : > { %660 = vmatprep.mubr.bf16.mxu0 %v3123_v0  ;;  %813 = vmatprep.mubr.bf16.mxu1 %v3123_v0 }
  0x73   : > { %997 = vperm.xlu0 %2941, %v919_v8  }
  0x74   : > { %977 = vperm.xlu1 %2942, %v915_v4  }
  0x78   : > { %982 = vperm.xlu1 %2942, %v916_v7  }
  0x79   : > { %661 = vmatmul.mubr.bf16.gmra.mrb[12].mxu0 %v2994_v61  ;;  %814 = vmatmul.mubr.bf16.gmra.mrb[12].mxu1 %v2994_v61 }
  0x7a   : > { %670 = vmatprep.mubr.bf16.mxu0 %v3123_v0  ;;  %823 = vmatprep.mubr.bf16.mxu1 %v3123_v0 }
  0x7c   : > { %992 = vperm.xlu1 %2942, %v918_v9  }
  0x81   : > { %671 = vmatmul.mubr.bf16.gmra.mrb[16].mxu0 %v2995_v1  ;;  %824 = vmatmul.mubr.bf16.gmra.mrb[16].mxu1 %v2995_v1 }
  0x82   : > { %680 = vmatprep.mubr.bf16.mxu0 %v3123_v0  ;;  %833 = vmatprep.mubr.bf16.mxu1 %v3123_v0 }
  0x89   : > { %681 = vmatmul.mubr.bf16.gmra.mrb[20].mxu0 %v2996_v6  ;;  %834 = vmatmul.mubr.bf16.gmra.mrb[20].mxu1 %v2996_v6 }
  0x8a   : > { %690 = vmatprep.mubr.bf16.mxu0 %v3123_v0  ;;  %843 = vmatprep.mubr.bf16.mxu1 %v3123_v0 }
  0x91   : > { %691 = vmatmul.mubr.bf16.gmra.mrb[24].mxu0 %v2997_v10  ;;  %844 = vmatmul.mubr.bf16.gmra.mrb[24].mxu1 %v2997_v10 }
  0x92   : > { %700 = vmatprep.mubr.bf16.mxu0 %v3123_v0  ;;  %853 = vmatprep.mubr.bf16.mxu1 %v3123_v0 }
  0x99   : > { %701 = vmatmul.mubr.bf16.gmra.mrb[28].mxu0 %v2998_v11  ;;  %854 = vmatmul.mubr.bf16.gmra.mrb[28].mxu1 %v2998_v11 }
  0x9a   : > { %710 = vmatprep.mubr.bf16.mxu0 %v3123_v0  ;;  %863 = vmatprep.mubr.bf16.mxu1 %v3123_v0 }
  0xa1   : > { %711 = vmatmul.mubr.bf16.gmra.mrb[32].mxu0 %v2999_v12  ;;  %864 = vmatmul.mubr.bf16.gmra.mrb[32].mxu1 %v2999_v12 }
  0xa2   : > { %720 = vmatprep.mubr.bf16.mxu0 %v3123_v0  ;;  %873 = vmatprep.mubr.bf16.mxu1 %v3123_v0 }
  0xa9   : > { %721 = vmatmul.mubr.bf16.gmra.mrb[36].mxu0 %v3000_v13  ;;  %874 = vmatmul.mubr.bf16.gmra.mrb[36].mxu1 %v3000_v13 }
  0xaa   : > { %730 = vmatprep.mubr.bf16.mxu0 %v3123_v0  ;;  %883 = vmatprep.mubr.bf16.mxu1 %v3123_v0 }
  0xb1   : > { %731 = vmatmul.mubr.bf16.gmra.mrb[40].mxu0 %v3001_v14  ;;  %884 = vmatmul.mubr.bf16.gmra.mrb[40].mxu1 %v3001_v14 }
  0xb2   : > { %740 = vmatprep.mubr.bf16.mxu0 %v3123_v0  ;;  %893 = vmatprep.mubr.bf16.mxu1 %v3123_v0 }
  0xb9   : > { %741 = vmatmul.mubr.bf16.gmra.mrb[44].mxu0 %v3002_v15  ;;  %894 = vmatmul.mubr.bf16.gmra.mrb[44].mxu1 %v3002_v15 }
  0xcb   : > { %v928_v23 = vpop.permute.xlu1 %927 }
  0xcf   : > { %v3450_v24 = vpop.permute.xlu1 %932 }
  0xd3   : > { %v938_v33 = vpop.permute.xlu1 %937 }
  0xd7   : > { %v943_v47 = vpop.permute.xlu1 %942 }
  0xdb   : > { %v948_v56 = vpop.permute.xlu1 %947 }
  0xdf   : > { %v953_v3 = vpop.permute.xlu1 %952 }
  0xe1   : > { %v300_v16 = vpop.xlane.xlu0 %299 }
  0xe2   : > { %v301_v17 = vrot.slane %v300_v16, 4 }
  0xe4   : > { %v302_v18 = vmin.f32 %v300_v16, %v301_v17 }
  0xe6   : > { %v303_v19 = vrot.slane %v302_v18, 2 }
  0xe8   : > { %v304_v20 = vmin.f32 %v302_v18, %v303_v19 }
  0xea   : > { %v305_v21 = vrot.slane %v304_v20, 1  ;;  %v923_v2 = vpop.permute.xlu0 %922 }
  0xec   : > { %v306_v22 = vmin.f32 %v304_v20, %v305_v21  ;;  %v958_v20 = vpop.permute.xlu1 %957 }
  0xee   : > { %2885 = vpush %v306_v22 }
  0xf0   : > { %v963_v38 = vpop.permute.xlu1 %962 }
 0x11f   : > { %s2886_s12 = spop %2885 }
 0x120   : > { %p308_p11 = scmp.gt.f32.partialorder %s2886_s12, 0.0 }
 0x122   : > { %p3468_p12 = por %p308_p11, %p268_p10 }
 0x134   : > { %v3452_v25 = vpop.f32.mrb[0].mxu0  ;;  %v3454_v0 = vpop.f32.mrb[0].mxu1 }
 0x135   : > { %4808 = vst [vmem:[#allocation12_spill] sm:$0xff] %v3452_v25  ;;  %4809 = vst [vmem:[#allocation13_spill] sm:$0xff] %v3454_v0  ;;  %v3456_v26 = vpop.f32.mrb[1].mxu0  ;;  %v3458_v27 = vpop.f32.mrb[1].mxu1 }
 0x136   : > { %4810 = vst [vmem:[#allocation14_spill] sm:$0xff] %v3456_v26  ;;  %4811 = vst [vmem:[#allocation15_spill] sm:$0xff] %v3458_v27  ;;  %v3460_v28 = vpop.f32.mrb[2].mxu0  ;;  %v3462_v29 = vpop.f32.mrb[2].mxu1 }
 0x137   : > { %4812 = vst [vmem:[#allocation16_spill] sm:$0xff] %v3460_v28  ;;  %4813 = vst [vmem:[#allocation17_spill] sm:$0xff] %v3462_v29  ;;  %v3464_v30 = vpop.f32.mrb[3].mxu0  ;;  %v3466_v31 = vpop.f32.mrb[3].mxu1 }
 0x138   : > { %4814 = vst [vmem:[#allocation18_spill] sm:$0xff] %v3464_v30  ;;  %4815 = vst [vmem:[#allocation19_spill] sm:$0xff] %v3466_v31  ;;  %v988_v29 = vpop.permute.xlu0 %987 }
 0x13c   : > { %v3472_v34 = vpop.f32.mrb[4].mxu0  ;;  %v3474_v36 = vpop.f32.mrb[4].mxu1 }
 0x13d   : > { %4817 = vst [vmem:[#allocation20_spill] sm:$0xff] %v3472_v34  ;;  %4818 = vst [vmem:[#allocation21_spill] sm:$0xff] %v3474_v36  ;;  %v3476_v37 = vpop.f32.mrb[5].mxu0  ;;  %v3478_v41 = vpop.f32.mrb[5].mxu1 }
 0x13e   : > { %4819 = vst [vmem:[#allocation22_spill] sm:$0xff] %v3476_v37  ;;  %4820 = vst [vmem:[#allocation23_spill] sm:$0xff] %v3478_v41  ;;  %v3480_v43 = vpop.f32.mrb[6].mxu0  ;;  %v3482_v44 = vpop.f32.mrb[6].mxu1 }
 0x13f   : > { %4821 = vst [vmem:[#allocation24_spill] sm:$0xff] %v3480_v43  ;;  %4822 = vst [vmem:[#allocation25_spill] sm:$0xff] %v3482_v44  ;;  %v3484_v45 = vpop.f32.mrb[7].mxu0  ;;  %v3486_v46 = vpop.f32.mrb[7].mxu1 }
 0x140   : > { %4823 = vst [vmem:[#allocation26_spill] sm:$0xff] %v3484_v45  ;;  %4824 = vst [vmem:[#allocation27_spill] sm:$0xff] %v3486_v46 }
 0x144   : > { %v3488_v48 = vpop.f32.mrb[8].mxu0  ;;  %v3490_v49 = vpop.f32.mrb[8].mxu1 }
 0x145   : > { %4825 = vst [vmem:[#allocation28_spill] sm:$0xff] %v3488_v48  ;;  %4826 = vst [vmem:[#allocation29_spill] sm:$0xff] %v3490_v49  ;;  %v3492_v50 = vpop.f32.mrb[9].mxu0  ;;  %v3494_v51 = vpop.f32.mrb[9].mxu1 }
 0x146   : > { %4827 = vst [vmem:[#allocation30_spill] sm:$0xff] %v3492_v50  ;;  %4828 = vst [vmem:[#allocation31_spill] sm:$0xff] %v3494_v51  ;;  %v3496_v52 = vpop.f32.mrb[10].mxu0  ;;  %v3498_v53 = vpop.f32.mrb[10].mxu1 }
 0x147   : > { %4829 = vst [vmem:[#allocation32_spill] sm:$0xff] %v3496_v52  ;;  %4830 = vst [vmem:[#allocation33_spill] sm:$0xff] %v3498_v53  ;;  %v3500_v54 = vpop.f32.mrb[11].mxu0  ;;  %v3502_v55 = vpop.f32.mrb[11].mxu1 }
 0x148   : > { %4831 = vst [vmem:[#allocation34_spill] sm:$0xff] %v3500_v54  ;;  %4832 = vst [vmem:[#allocation35_spill] sm:$0xff] %v3502_v55 }
 0x14c   : > { %v3504_v57 = vpop.f32.mrb[12].mxu0  ;;  %v3506_v58 = vpop.f32.mrb[12].mxu1 }
 0x14d   : > { %4833 = vst [vmem:[#allocation36_spill] sm:$0xff] %v3504_v57  ;;  %4834 = vst [vmem:[#allocation37_spill] sm:$0xff] %v3506_v58  ;;  %v3508_v59 = vpop.f32.mrb[13].mxu0  ;;  %v3510_v60 = vpop.f32.mrb[13].mxu1 }
 0x14e   : > { %4835 = vst [vmem:[#allocation38_spill] sm:$0xff] %v3508_v59  ;;  %4836 = vst [vmem:[#allocation39_spill] sm:$0xff] %v3510_v60  ;;  %v3512_v61 = vpop.f32.mrb[14].mxu0  ;;  %v3514_v62 = vpop.f32.mrb[14].mxu1 }
 0x14f   : > { %4837 = vst [vmem:[#allocation40_spill] sm:$0xff] %v3512_v61  ;;  %4838 = vst [vmem:[#allocation41_spill] sm:$0xff] %v3514_v62  ;;  %v3516_v63 = vpop.f32.mrb[15].mxu0  ;;  %v3518_v1 = vpop.f32.mrb[15].mxu1 }
 0x150   : > { %4839 = vst [vmem:[#allocation42_spill] sm:$0xff] %v3516_v63  ;;  %4840 = vst [vmem:[#allocation43_spill] sm:$0xff] %v3518_v1 }
 0x154   : > { %v672_v4 = vpop.f32.mrb[16].mxu0  ;;  %v825_v5 = vpop.f32.mrb[16].mxu1 }
 0x155   : > { %v3520_v6 = vadd.f32 %v923_v2, %v672_v4  ;;  %v3522_v7 = vadd.f32 %v923_v2, %v825_v5  ;;  %v674_v8 = vpop.f32.mrb[17].mxu0  ;;  %v827_v9 = vpop.f32.mrb[17].mxu1 }
 0x156   : > { %v3524_v10 = vadd.f32 %v923_v2, %v674_v8  ;;  %v3526_v11 = vadd.f32 %v923_v2, %v827_v9  ;;  %v676_v12 = vpop.f32.mrb[18].mxu0  ;;  %v829_v13 = vpop.f32.mrb[18].mxu1 }
 0x157   : > { %4841 = vst [vmem:[#allocation44_spill] sm:$0xff] %v3520_v6  ;;  %4842 = vst [vmem:[#allocation45_spill] sm:$0xff] %v3522_v7  ;;  %v3528_v14 = vadd.f32 %v928_v23, %v676_v12  ;;  %v3530_v15 = vadd.f32 %v928_v23, %v829_v13  ;;  %v678_v16 = vpop.f32.mrb[19].mxu0  ;;  %v831_v17 = vpop.f32.mrb[19].mxu1 }
 0x158   : > { %4843 = vst [vmem:[#allocation46_spill] sm:$0xff] %v3524_v10  ;;  %4844 = vst [vmem:[#allocation47_spill] sm:$0xff] %v3526_v11  ;;  %v3532_v18 = vadd.f32 %v928_v23, %v678_v16  ;;  %v3534_v19 = vadd.f32 %v928_v23, %v831_v17 }
 0x159   : > { %4845 = vst [vmem:[#allocation48_spill] sm:$0xff] %v3528_v14  ;;  %4846 = vst [vmem:[#allocation49_spill] sm:$0xff] %v3530_v15 }
 0x15a   : > { %4847 = vst [vmem:[#allocation50_spill] sm:$0xff] %v3532_v18  ;;  %4848 = vst [vmem:[#allocation51_spill] sm:$0xff] %v3534_v19 }
 0x15c   : > { %v682_v21 = vpop.f32.mrb[20].mxu0  ;;  %v835_v22 = vpop.f32.mrb[20].mxu1 }
 0x15d   : > { %v3537_v4 = vadd.f32 %v3450_v24, %v682_v21  ;;  %v3540_v2 = vadd.f32 %v3450_v24, %v835_v22  ;;  %v684_v5 = vpop.f32.mrb[21].mxu0  ;;  %v837_v8 = vpop.f32.mrb[21].mxu1 }
 0x15e   : > { %v3543_v9 = vadd.f32 %v3450_v24, %v684_v5  ;;  %v3546_v12 = vadd.f32 %v3450_v24, %v837_v8  ;;  %v686_v13 = vpop.f32.mrb[22].mxu0  ;;  %v839_v23 = vpop.f32.mrb[22].mxu1 }
 0x15f   : > { %4849 = vst [vmem:[#allocation52_spill] sm:$0xff] %v3537_v4  ;;  %4850 = vst [vmem:[#allocation53_spill] sm:$0xff] %v3540_v2  ;;  %v3548_v16 = vadd.f32 %v938_v33, %v686_v13  ;;  %v3550_v17 = vadd.f32 %v938_v33, %v839_v23  ;;  %v688_v40 = vpop.f32.mrb[23].mxu0  ;;  %v841_v21 = vpop.f32.mrb[23].mxu1 }
 0x160   : > { %4851 = vst [vmem:[#allocation54_spill] sm:$0xff] %v3543_v9  ;;  %4852 = vst [vmem:[#allocation55_spill] sm:$0xff] %v3546_v12  ;;  %v3552_v39 = vadd.f32 %v938_v33, %v688_v40  ;;  %v3554_v22 = vadd.f32 %v938_v33, %v841_v21 }
 0x161   : > { %4853 = vst [vmem:[#allocation56_spill] sm:$0xff] %v3548_v16  ;;  %4854 = vst [vmem:[#allocation57_spill] sm:$0xff] %v3550_v17 }
 0x162   : > { %4855 = vst [vmem:[#allocation58_spill] sm:$0xff] %v3552_v39  ;;  %4856 = vst [vmem:[#allocation59_spill] sm:$0xff] %v3554_v22 }
 0x164   : > { %v692_v35 = vpop.f32.mrb[24].mxu0  ;;  %v845_v32 = vpop.f32.mrb[24].mxu1 }
 0x165   : > { %v3556_v5 = vadd.f32 %v943_v47, %v692_v35  ;;  %v3558_v42 = vadd.f32 %v943_v47, %v845_v32  ;;  %v694_v24 = vpop.f32.mrb[25].mxu0  ;;  %v847_v8 = vpop.f32.mrb[25].mxu1 }
 0x166   : > { %v3560_v1 = vadd.f32 %v943_v47, %v694_v24  ;;  %v3562_v13 = vadd.f32 %v943_v47, %v847_v8  ;;  %v696_v23 = vpop.f32.mrb[26].mxu0  ;;  %v849_v62 = vpop.f32.mrb[26].mxu1 }
 0x167   : > { %4857 = vst [vmem:[#allocation60_spill] sm:$0xff] %v3556_v5  ;;  %4858 = vst [vmem:[#allocation61_spill] sm:$0xff] %v3558_v42  ;;  %v3564_v63 = vadd.f32 %v948_v56, %v696_v23  ;;  %v3566_v40 = vadd.f32 %v948_v56, %v849_v62  ;;  %v698_v33 = vpop.f32.mrb[27].mxu0  ;;  %v851_v21 = vpop.f32.mrb[27].mxu1 }
 0x168   : > { %4859 = vst [vmem:[#allocation62_spill] sm:$0xff] %v3560_v1  ;;  %4860 = vst [vmem:[#allocation63_spill] sm:$0xff] %v3562_v13  ;;  %v3568_v61 = vadd.f32 %v948_v56, %v698_v33  ;;  %v3570_v35 = vadd.f32 %v948_v56, %v851_v21  ;;  %v968_v32 = vpop.permute.xlu1 %967 }
 0x169   : > { %4861 = vst [vmem:[#allocation64_spill] sm:$0xff] %v3564_v63  ;;  %4862 = vst [vmem:[#allocation65_spill] sm:$0xff] %v3566_v40 }
 0x16a   : > { %4863 = vst [vmem:[#allocation66_spill] sm:$0xff] %v3568_v61  ;;  %4864 = vst [vmem:[#allocation67_spill] sm:$0xff] %v3570_v35 }
 0x16c   : > { %v702_v60 = vpop.f32.mrb[28].mxu0  ;;  %v855_v58 = vpop.f32.mrb[28].mxu1 }
 0x16d   : > { %v3572_v59 = vadd.f32 %v953_v3, %v702_v60  ;;  %v3574_v24 = vadd.f32 %v953_v3, %v855_v58  ;;  %v704_v47 = vpop.f32.mrb[29].mxu0  ;;  %v857_v8 = vpop.f32.mrb[29].mxu1 }
 0x16e   : > { %v3576_v57 = vadd.f32 %v953_v3, %v704_v47  ;;  %v3578_v23 = vadd.f32 %v953_v3, %v857_v8  ;;  %v706_v62 = vpop.f32.mrb[30].mxu0  ;;  %v859_v55 = vpop.f32.mrb[30].mxu1 }
 0x16f   : > { %4865 = vst [vmem:[#allocation68_spill] sm:$0xff] %v3572_v59  ;;  %4866 = vst [vmem:[#allocation69_spill] sm:$0xff] %v3574_v24  ;;  %v3580_v53 = vadd.f32 %v958_v20, %v706_v62  ;;  %v3582_v33 = vadd.f32 %v958_v20, %v859_v55  ;;  %v708_v56 = vpop.f32.mrb[31].mxu0  ;;  %v861_v21 = vpop.f32.mrb[31].mxu1 }
 0x170   : > { %4867 = vst [vmem:[#allocation70_spill] sm:$0xff] %v3576_v57  ;;  %4868 = vst [vmem:[#allocation71_spill] sm:$0xff] %v3578_v23  ;;  %v3584_v54 = vadd.f32 %v958_v20, %v708_v56  ;;  %v3586_v60 = vadd.f32 %v958_v20, %v861_v21  ;;  %v973_v58 = vpop.permute.xlu1 %972 }
 0x171   : > { %4869 = vst [vmem:[#allocation72_spill] sm:$0xff] %v3580_v53  ;;  %4870 = vst [vmem:[#allocation73_spill] sm:$0xff] %v3582_v33 }
 0x172   : > { %4871 = vst [vmem:[#allocation74_spill] sm:$0xff] %v3584_v54  ;;  %4872 = vst [vmem:[#allocation75_spill] sm:$0xff] %v3586_v60 }
 0x174   : > { %v712_v52 = vpop.f32.mrb[32].mxu0  ;;  %v865_v51 = vpop.f32.mrb[32].mxu1 }
 0x175   : > { %v3588_v49 = vadd.f32 %v963_v38, %v712_v52  ;;  %v3590_v47 = vadd.f32 %v963_v38, %v865_v51  ;;  %v714_v3 = vpop.f32.mrb[33].mxu0  ;;  %v867_v8 = vpop.f32.mrb[33].mxu1 }
 0x176   : > { %v3592_v50 = vadd.f32 %v963_v38, %v714_v3  ;;  %v3594_v62 = vadd.f32 %v963_v38, %v867_v8  ;;  %v716_v55 = vpop.f32.mrb[34].mxu0  ;;  %v869_v48 = vpop.f32.mrb[34].mxu1 }
 0x177   : > { %4873 = vst [vmem:[#allocation76_spill] sm:$0xff] %v3588_v49  ;;  %4874 = vst [vmem:[#allocation77_spill] sm:$0xff] %v3590_v47  ;;  %v3596_v46 = vadd.f32 %v968_v32, %v716_v55  ;;  %v3598_v56 = vadd.f32 %v968_v32, %v869_v48  ;;  %v718_v20 = vpop.f32.mrb[35].mxu0  ;;  %v871_v21 = vpop.f32.mrb[35].mxu1 }
 0x178   : > { %4875 = vst [vmem:[#allocation78_spill] sm:$0xff] %v3592_v50  ;;  %4876 = vst [vmem:[#allocation79_spill] sm:$0xff] %v3594_v62  ;;  %v3600_v44 = vadd.f32 %v968_v32, %v718_v20  ;;  %v3602_v52 = vadd.f32 %v968_v32, %v871_v21  ;;  %v978_v51 = vpop.permute.xlu1 %977 }
 0x179   : > { %4877 = vst [vmem:[#allocation80_spill] sm:$0xff] %v3596_v46  ;;  %4878 = vst [vmem:[#allocation81_spill] sm:$0xff] %v3598_v56 }
 0x17a   : > { %4879 = vst [vmem:[#allocation82_spill] sm:$0xff] %v3600_v44  ;;  %4880 = vst [vmem:[#allocation83_spill] sm:$0xff] %v3602_v52 }
 0x17c   : > { %v722_v45 = vpop.f32.mrb[36].mxu0  ;;  %v875_v43 = vpop.f32.mrb[36].mxu1 }
 0x17d   : > { %v3604_v41 = vadd.f32 %v973_v58, %v722_v45  ;;  %v3606_v3 = vadd.f32 %v973_v58, %v875_v43  ;;  %v724_v38 = vpop.f32.mrb[37].mxu0  ;;  %v877_v8 = vpop.f32.mrb[37].mxu1 }
 0x17e   : > { %v3608_v36 = vadd.f32 %v973_v58, %v724_v38  ;;  %v3610_v55 = vadd.f32 %v973_v58, %v877_v8  ;;  %v726_v48 = vpop.f32.mrb[38].mxu0  ;;  %v879_v37 = vpop.f32.mrb[38].mxu1 }
 0x17f   : > { %4881 = vst [vmem:[#allocation84_spill] sm:$0xff] %v3604_v41  ;;  %4882 = vst [vmem:[#allocation85_spill] sm:$0xff] %v3606_v3  ;;  %v3612_v34 = vadd.f32 %v978_v51, %v726_v48  ;;  %v3614_v20 = vadd.f32 %v978_v51, %v879_v37  ;;  %v728_v32 = vpop.f32.mrb[39].mxu0  ;;  %v881_v21 = vpop.f32.mrb[39].mxu1 }
 0x180   : > { %4883 = vst [vmem:[#allocation86_spill] sm:$0xff] %v3608_v36  ;;  %4884 = vst [vmem:[#allocation87_spill] sm:$0xff] %v3610_v55  ;;  %v3616_v31 = vadd.f32 %v978_v51, %v728_v32  ;;  %v3618_v45 = vadd.f32 %v978_v51, %v881_v21  ;;  %v983_v43 = vpop.permute.xlu1 %982 }
 0x181   : > { %4885 = vst [vmem:[#allocation88_spill] sm:$0xff] %v3612_v34  ;;  %4886 = vst [vmem:[#allocation89_spill] sm:$0xff] %v3614_v20 }
 0x182   : > { %4887 = vst [vmem:[#allocation90_spill] sm:$0xff] %v3616_v31  ;;  %4888 = vst [vmem:[#allocation91_spill] sm:$0xff] %v3618_v45 }
 0x184   : > { %v732_v30 = vpop.f32.mrb[40].mxu0  ;;  %v885_v28 = vpop.f32.mrb[40].mxu1 }
 0x185   : > { %v3620_v38 = vadd.f32 %v983_v43, %v732_v30  ;;  %v3622_v58 = vadd.f32 %v983_v43, %v885_v28  ;;  %v734_v8 = vpop.f32.mrb[41].mxu0  ;;  %v887_v27 = vpop.f32.mrb[41].mxu1 }
 0x186   : > { %v3624_v48 = vadd.f32 %v983_v43, %v734_v8  ;;  %v3626_v37 = vadd.f32 %v983_v43, %v887_v27  ;;  %v736_v0 = vpop.f32.mrb[42].mxu0  ;;  %v889_v26 = vpop.f32.mrb[42].mxu1 }
 0x187   : > { %4889 = vst [vmem:[#allocation92_spill] sm:$0xff] %v3620_v38  ;;  %4890 = vst [vmem:[#allocation93_spill] sm:$0xff] %v3622_v58  ;;  %v3628_v32 = vadd.f32 %v988_v29, %v736_v0  ;;  %v3630_v51 = vadd.f32 %v988_v29, %v889_v26  ;;  %v738_v21 = vpop.f32.mrb[43].mxu0  ;;  %v891_v25 = vpop.f32.mrb[43].mxu1 }
 0x188   : > { %4891 = vst [vmem:[#allocation94_spill] sm:$0xff] %v3624_v48  ;;  %4892 = vst [vmem:[#allocation95_spill] sm:$0xff] %v3626_v37  ;;  %v3632_v45 = vadd.f32 %v988_v29, %v738_v21  ;;  %v3634_v30 = vadd.f32 %v988_v29, %v891_v25  ;;  %v993_v28 = vpop.permute.xlu1 %992  ;;  %v998_v58 = vpop.permute.xlu0 %997 }
 0x189   : > { %4893 = vst [vmem:[#allocation96_spill] sm:$0xff] %v3628_v32  ;;  %4894 = vst [vmem:[#allocation97_spill] sm:$0xff] %v3630_v51 }
 0x18a   : > { %4895 = vst [vmem:[#allocation98_spill] sm:$0xff] %v3632_v45  ;;  %4896 = vst [vmem:[#allocation99_spill] sm:$0xff] %v3634_v30 }
 0x18c   : > { %v742_v38 = vpop.f32.mrb[44].mxu0  ;;  %v895_v8 = vpop.f32.mrb[44].mxu1  ;;  %1066 = sbr.rel (!%p3468_p12) target bundleno = 419 (0x1a3), region = 48 }
 0x18d   : > { %v3636_v48 = vadd.f32 %v993_v28, %v742_v38  ;;  %v3638_v27 = vadd.f32 %v993_v28, %v895_v8  ;;  %v744_v43 = vpop.f32.mrb[45].mxu0  ;;  %v897_v0 = vpop.f32.mrb[45].mxu1  ;;  %v2824_v8 = vpack.c.bf16 (%p3468_p12), %v3543_v9, %v3537_v4 }
 0x18e   : > { %v3640_v32 = vadd.f32 %v993_v28, %v744_v43  ;;  %v3642_v26 = vadd.f32 %v993_v28, %v897_v0  ;;  %v746_v51 = vpop.f32.mrb[46].mxu0  ;;  %v899_v21 = vpop.f32.mrb[46].mxu1  ;;  %v2821_v28 = vpack.c.bf16 (%p3468_p12), %v3526_v11, %v3522_v7  ;;  %v2825_v43 = vpack.c.bf16 (%p3468_p12), %v3546_v12, %v3540_v2 }
 0x18f   : > { %4897 = vst [vmem:[#allocation100_spill] sm:$0xff] %v3636_v48  ;;  %4898 = vst [vmem:[#allocation101_spill] sm:$0xff] %v3638_v27  ;;  %v3644_v45 = vadd.f32 %v998_v58, %v746_v51  ;;  %v3646_v25 = vadd.f32 %v998_v58, %v899_v21  ;;  %v748_v29 = vpop.f32.mrb[47].mxu0  ;;  %v901_v30 = vpop.f32.mrb[47].mxu1  ;;  %v2820_v51 = vpack.c.bf16 (%p3468_p12), %v3524_v10, %v3520_v6 }
 0x190   : > { %4899 = vst [vmem:[#allocation102_spill] sm:$0xff] %v3640_v32  ;;  %4900 = vst [vmem:[#allocation103_spill] sm:$0xff] %v3642_v26  ;;  %v3648_v37 = vadd.f32 %v998_v58, %v748_v29  ;;  %v3650_v38 = vadd.f32 %v998_v58, %v901_v30  ;;  %v2822_v58 = vpack.c.bf16 (%p3468_p12), %v3532_v18, %v3528_v14 }
 0x191   : > { %4901 = vst [vmem:[#allocation104_spill] sm:$0xff] %v3644_v45  ;;  %4902 = vst [vmem:[#allocation105_spill] sm:$0xff] %v3646_v25  ;;  %v2823_v30 = vpack.c.bf16 (%p3468_p12), %v3534_v19, %v3530_v15  ;;  %v2826_v0 = vpack.c.bf16 (%p3468_p12), %v3552_v39, %v3548_v16  ;;  %v2827_v21 = vpack.c.bf16 (%p3468_p12), %v3554_v22, %v3550_v17 }
 0x192   : > { %4903 = vst [vmem:[#allocation106_spill] sm:$0xff] %v3648_v37  ;;  %4904 = vst [vmem:[#allocation107_spill] sm:$0xff] %v3650_v38  ;;  %v2828_v29 = vpack.c.bf16 (%p3468_p12), %v3560_v1, %v3556_v5  ;;  %v2829_v12 = vpack.c.bf16 (%p3468_p12), %v3562_v13, %v3558_v42  ;;  %v2830_v39 = vpack.c.bf16 (%p3468_p12), %v3568_v61, %v3564_v63 }
 0x193   : > { %1259 = vst [vmem:[%s3654_s15] sm:$0xff] %v2820_v51  ;;  %1260 = vst [vmem:[%s3654_s15 + $0x8] sm:$0xff] %v2821_v28  ;;  %v2831_v22 = vpack.c.bf16 %v3570_v35, %v3566_v40  ;;  %v2832_v51 = vpack.c.bf16 %v3576_v57, %v3572_v59  ;;  %v2833_v28 = vpack.c.bf16 %v3578_v23, %v3574_v24 }
 0x194   : > { %1261 = vst [vmem:[%s3654_s15 + $0x10] sm:$0xff] %v2822_v58  ;;  %1262 = vst [vmem:[%s3654_s15 + $0x18] sm:$0xff] %v2823_v30  ;;  %v2834_v58 = vpack.c.bf16 %v3584_v54, %v3580_v53  ;;  %v2835_v30 = vpack.c.bf16 %v3586_v60, %v3582_v33 }
 0x195   : > { %1263 = vst [vmem:[%s3654_s15 + $0x20] sm:$0xff] %v2824_v8  ;;  %1264 = vst [vmem:[%s3654_s15 + $0x28] sm:$0xff] %v2825_v43  ;;  %v2836_v8 = vpack.c.bf16 %v3592_v50, %v3588_v49  ;;  %v2837_v43 = vpack.c.bf16 %v3594_v62, %v3590_v47 }
 0x196   : > { %1265 = vst [vmem:[%s3654_s15 + $0x30] sm:$0xff] %v2826_v0  ;;  %1266 = vst [vmem:[%s3654_s15 + $0x38] sm:$0xff] %v2827_v21  ;;  %v2838_v0 = vpack.c.bf16 %v3600_v44, %v3596_v46  ;;  %v2839_v21 = vpack.c.bf16 %v3602_v52, %v3598_v56 }
 0x197   : > { %1267 = vst [vmem:[%s3654_s15 + $0x40] sm:$0xff] %v2828_v29  ;;  %1268 = vst [vmem:[%s3654_s15 + $0x48] sm:$0xff] %v2829_v12  ;;  %v2841_v12 = vpack.c.bf16 %v3610_v55, %v3606_v3  ;;  %v4905_v29 = vld [vmem:[#allocation91_spill] sm:$0xff]  ;;  %v4910_v3 = vld [vmem:[#allocation96_spill] sm:$0xff] }
 0x198   : > { %1269 = vst [vmem:[%s3654_s15 + $0x50] sm:$0xff] %v2830_v39  ;;  %1270 = vst [vmem:[%s3654_s15 + $0x58] sm:$0xff] %v2831_v22  ;;  %v2840_v39 = vpack.c.bf16 %v3608_v36, %v3604_v41  ;;  %v2842_v22 = vpack.c.bf16 %v3616_v31, %v3612_v34  ;;  %v2843_v52 = vpack.c.bf16 %v4905_v29, %v3614_v20  ;;  %v4909_v36 = vld [vmem:[#allocation95_spill] sm:$0xff]  ;;  %v4911_v31 = vld [vmem:[#allocation98_spill] sm:$0xff] }
 0x199   : > { %1271 = vst [vmem:[%s3654_s15 + $0x60] sm:$0xff] %v2832_v51  ;;  %1272 = vst [vmem:[%s3654_s15 + $0x68] sm:$0xff] %v2833_v28  ;;  %v4906_v51 = vld [vmem:[#allocation92_spill] sm:$0xff]  ;;  %v4907_v28 = vld [vmem:[#allocation94_spill] sm:$0xff]  ;;  %v2846_v34 = vpack.c.bf16 %v4911_v31, %v4910_v3  ;;  %v2851_v31 = vpack.c.bf16 %v3650_v38, %v3646_v25 }
 0x19a   : > { %1273 = vst [vmem:[%s3654_s15 + $0x70] sm:$0xff] %v2834_v58  ;;  %1274 = vst [vmem:[%s3654_s15 + $0x78] sm:$0xff] %v2835_v30  ;;  %v2844_v58 = vpack.c.bf16 %v4907_v28, %v4906_v51  ;;  %v4908_v30 = vld [vmem:[#allocation93_spill] sm:$0xff] }
 0x19b   : > { %1275 = vst [vmem:[%s3654_s15 + $0x80] sm:$0xff] %v2836_v8  ;;  %1276 = vst [vmem:[%s3654_s15 + $0x88] sm:$0xff] %v2837_v43  ;;  %v2845_v55 = vpack.c.bf16 %v4909_v36, %v4908_v30  ;;  %v4912_v29 = vld [vmem:[#allocation97_spill] sm:$0xff]  ;;  %v4913_v8 = vld [vmem:[#allocation99_spill] sm:$0xff]  ;;  %v2850_v36 = vpack.c.bf16 %v3648_v37, %v3644_v45 }
 0x19c   : > { %1277 = vst [vmem:[%s3654_s15 + $0x90] sm:$0xff] %v2838_v0  ;;  %1278 = vst [vmem:[%s3654_s15 + $0x98] sm:$0xff] %v2839_v21  ;;  %v2847_v43 = vpack.c.bf16 %v4913_v8, %v4912_v29  ;;  %v2848_v0 = vpack.c.bf16 %v3640_v32, %v3636_v48  ;;  %v2849_v21 = vpack.c.bf16 %v3642_v26, %v3638_v27 }
 0x19d   : > { %1279 = vst [vmem:[%s3654_s15 + $0xa0] sm:$0xff] %v2840_v39  ;;  %1280 = vst [vmem:[%s3654_s15 + $0xa8] sm:$0xff] %v2841_v12 }
 0x19e   : > { %1281 = vst [vmem:[%s3654_s15 + $0xb0] sm:$0xff] %v2842_v22  ;;  %1282 = vst [vmem:[%s3654_s15 + $0xb8] sm:$0xff] %v2843_v52 }
 0x19f   : > { %1283 = vst [vmem:[%s3654_s15 + $0xc0] sm:$0xff] %v2844_v58  ;;  %1284 = vst [vmem:[%s3654_s15 + $0xc8] sm:$0xff] %v2845_v55 }
 0x1a0   : > { %1285 = vst [vmem:[%s3654_s15 + $0xd0] sm:$0xff] %v2846_v34  ;;  %1286 = vst [vmem:[%s3654_s15 + $0xd8] sm:$0xff] %v2847_v43 }
 0x1a1   : > { %1287 = vst [vmem:[%s3654_s15 + $0xe0] sm:$0xff] %v2848_v0  ;;  %1288 = vst [vmem:[%s3654_s15 + $0xe8] sm:$0xff] %v2849_v21 }
 0x1a2   : > { %1289 = vst [vmem:[%s3654_s15 + $0xf0] sm:$0xff] %v2850_v36  ;;  %1290 = vst [vmem:[%s3654_s15 + $0xf8] sm:$0xff] %v2851_v31 }
 0x1a3 PF: > { %1293 = sbr.rel (%p3468_p12) target bundleno = 970 (0x3ca), region = 52  ;;  %v1296_v52 = vld [vmem:[%s4733_s5 + $0x10] sm:$0xff] (!%p3468_p12)  ;;  %v1294_v3 = vld [vmem:[%s4733_s5] sm:$0xff] (!%p3468_p12)  ;;  %v4752_v39 = vmov (!%p3468_p12), 0   ;;  %v1297_v34 = vld [vmem:[%s4733_s5 + $0x18] sm:$0xff] (!%p3468_p12) }
 0x1a4   : > { %3004 = vset.pattern.permute.xlu1 (!%p3468_p12), %v4752_v39  ;;  %3003 = vset.pattern.permute.xlu0 (!%p3468_p12), %v4752_v39  ;;  %v1295_v55 = vld [vmem:[%s4733_s5 + $0x8] sm:$0xff] (!%p3468_p12)  ;;  %v1298_v22 = vld [vmem:[%s4733_s5 + $0x20] sm:$0xff] (!%p3468_p12)  ;;  %v1301_v51 = vld [vmem:[%s4733_s5 + $0x38] sm:$0xff] (!%p3468_p12) }
 0x1a5   : > { %1346 = vperm.xlu1 (!%p3468_p12), %3004, %v1296_v52   ;;  %1336 = vperm.xlu0 (!%p3468_p12), %3003, %v1294_v3   ;;  %v1299_v12 = vld [vmem:[%s4733_s5 + $0x28] sm:$0xff] (!%p3468_p12)  ;;  %v1300_v28 = vld [vmem:[%s4733_s5 + $0x30] sm:$0xff] (!%p3468_p12)  ;;  %v1302_v30 = vld [vmem:[%s4733_s5 + $0x40] sm:$0xff] (!%p3468_p12) }
 0x1a6   : > { %2072 = vmatprep.mubr.bf16.mxu0 (!%p3468_p12), %v4752_v39  ;;  %2185 = vmatprep.mubr.bf16.mxu1 (!%p3468_p12), %v4752_v39  ;;  %v1303_v58 = vld [vmem:[%s4733_s5 + $0x48] sm:$0xff] (!%p3468_p12)  ;;  %v1310_v8 = vld [vmem:[%s4733_s5 + $0x80] sm:$0xff] (!%p3468_p12)  ;;  %v1305_v43 = vld [vmem:[%s4733_s5 + $0x58] sm:$0xff] (!%p3468_p12) }
 0x1a7   : > { %v1311_v29 = vld [vmem:[%s4733_s5 + $0x88] sm:$0xff] (!%p3468_p12)  ;;  %v1304_v0 = vld [vmem:[%s4733_s5 + $0x50] sm:$0xff] (!%p3468_p12)  ;;  %v1313_v21 = vld [vmem:[%s4733_s5 + $0x98] sm:$0xff] (!%p3468_p12) }
 0x1a8   : > { %v1312_v36 = vld [vmem:[%s4733_s5 + $0x90] sm:$0xff] (!%p3468_p12)  ;;  %v1307_v31 = vld [vmem:[%s4733_s5 + $0x68] sm:$0xff] (!%p3468_p12)  ;;  %v1306_v52 = vld [vmem:[%s4733_s5 + $0x60] sm:$0xff] (!%p3468_p12) }
 0x1a9   : > { %1351 = vperm.xlu1 (!%p3468_p12), %3004, %v1297_v34   ;;  %1341 = vperm.xlu0 (!%p3468_p12), %3003, %v1295_v55   ;;  %v1315_v3 = vld [vmem:[%s4733_s5 + $0xa8] sm:$0xff] (!%p3468_p12)  ;;  %v1314_v34 = vld [vmem:[%s4733_s5 + $0xa0] sm:$0xff] (!%p3468_p12)  ;;  %v1309_v55 = vld [vmem:[%s4733_s5 + $0x78] sm:$0xff] (!%p3468_p12) }
 0x1aa   : > { %v4926_v45 = vld [vmem:[#allocation24_spill] sm:$0xff]  ;;  %v4927_v27 = vld [vmem:[#allocation26_spill] sm:$0xff]  ;;  %v4929_v48 = vld [vmem:[#allocation27_spill] sm:$0xff] }
 0x1ab   : > { %v4930_v46 = vld [vmem:[#allocation28_spill] sm:$0xff]  ;;  %v4931_v47 = vld [vmem:[#allocation30_spill] sm:$0xff]  ;;  %v4932_v50 = vld [vmem:[#allocation29_spill] sm:$0xff] }
 0x1ac   : > { %v4933_v49 = vld [vmem:[#allocation31_spill] sm:$0xff]  ;;  %v4939_v24 = vld [vmem:[#allocation38_spill] sm:$0xff]  ;;  %v4940_v57 = vld [vmem:[#allocation37_spill] sm:$0xff] }
 0x1ad   : > { %1361 = vperm.xlu1 %3004, %v1299_v12   ;;  %1356 = vperm.xlu0 %3003, %v1298_v22   ;;  %v1308_v12 = vld [vmem:[%s4733_s5 + $0x70] sm:$0xff]  ;;  %v1317_v22 = vld [vmem:[%s4733_s5 + $0xb8] sm:$0xff]  ;;  %v4945_v63 = vld [vmem:[#allocation43_spill] sm:$0xff] }
 0x1ae   : > { %v4944_v13 = vld [vmem:[#allocation41_spill] sm:$0xff] }
 0x1b1   : > { %1371 = vperm.xlu1 %3004, %v1301_v51   ;;  %1366 = vperm.xlu0 %3003, %v1300_v28   ;;  %v1316_v51 = vld [vmem:[%s4733_s5 + $0xb0] sm:$0xff]  ;;  %v1319_v28 = vld [vmem:[%s4733_s5 + $0xc8] sm:$0xff] }
 0x1b5   : > { %1630 = vperm.xlu1 %3004, %v1303_v58   ;;  %1625 = vperm.xlu0 %3003, %v1302_v30   ;;  %v1318_v58 = vld [vmem:[%s4733_s5 + $0xc0] sm:$0xff]  ;;  %v1321_v30 = vld [vmem:[%s4733_s5 + $0xd8] sm:$0xff] }
 0x1b9   : > { %1702 = vperm.xlu1 %3004, %v1311_v29   ;;  %1697 = vperm.xlu0 %3003, %v1310_v8   ;;  %v1320_v29 = vld [vmem:[%s4733_s5 + $0xd0] sm:$0xff]  ;;  %v1323_v8 = vld [vmem:[%s4733_s5 + $0xe8] sm:$0xff] }
 0x1bd   : > { %1640 = vperm.xlu1 %3004, %v1305_v43   ;;  %1635 = vperm.xlu0 %3003, %v1304_v0   ;;  %v1322_v43 = vld [vmem:[%s4733_s5 + $0xe0] sm:$0xff]  ;;  %v1325_v0 = vld [vmem:[%s4733_s5 + $0xf8] sm:$0xff] }
 0x1c1   : > { %1712 = vperm.xlu1 %3004, %v1313_v21   ;;  %1707 = vperm.xlu0 %3003, %v1312_v36   ;;  %v1324_v21 = vld [vmem:[%s4733_s5 + $0xf0] sm:$0xff]  ;;  %v1327_v36 = vld [vmem:[%s4733_s5 + $0x108] sm:$0xff] }
 0x1c5   : > { %1650 = vperm.xlu1 %3004, %v1307_v31   ;;  %1645 = vperm.xlu0 %3003, %v1306_v52   ;;  %v1326_v31 = vld [vmem:[%s4733_s5 + $0x100] sm:$0xff]  ;;  %v1329_v52 = vld [vmem:[%s4733_s5 + $0x118] sm:$0xff] }
 0x1c9   : > { %1722 = vperm.xlu1 %3004, %v1315_v3   ;;  %1717 = vperm.xlu0 %3003, %v1314_v34   ;;  %v1328_v3 = vld [vmem:[%s4733_s5 + $0x110] sm:$0xff]  ;;  %v1331_v34 = vld [vmem:[%s4733_s5 + $0x128] sm:$0xff] }
 0x1cd   : > { %1660 = vperm.xlu1 %3004, %v1309_v55   ;;  %1655 = vperm.xlu0 %3003, %v1308_v12   ;;  %v1330_v55 = vld [vmem:[%s4733_s5 + $0x120] sm:$0xff]  ;;  %v1333_v12 = vld [vmem:[%s4733_s5 + $0x138] sm:$0xff] }
 0x1d1   : > { %1732 = vperm.xlu1 %3004, %v1317_v22   ;;  %1727 = vperm.xlu0 %3003, %v1316_v51   ;;  %v1332_v22 = vld [vmem:[%s4733_s5 + $0x130] sm:$0xff] }
 0x1d5   : > { %1902 = vperm.xlu1 %3004, %v1319_v28   ;;  %1897 = vperm.xlu0 %3003, %v1318_v58  }
 0x1d9   : > { %1912 = vperm.xlu1 %3004, %v1321_v30   ;;  %1907 = vperm.xlu0 %3003, %v1320_v29   ;;  %v4914_v29 = vld [vmem:[#allocation12_spill] sm:$0xff] }
 0x1dd   : > { %1922 = vperm.xlu1 %3004, %v1323_v8   ;;  %1917 = vperm.xlu0 %3003, %v1322_v43   ;;  %v4915_v43 = vld [vmem:[#allocation14_spill] sm:$0xff] }
 0x1e1   : > { %1932 = vperm.xlu1 %3004, %v1325_v0   ;;  %1927 = vperm.xlu0 %3003, %v1324_v21   ;;  %v4916_v21 = vld [vmem:[#allocation13_spill] sm:$0xff] }
 0x1e5   : > { %1942 = vperm.xlu1 %3004, %v1327_v36   ;;  %1937 = vperm.xlu0 %3003, %v1326_v31   ;;  %v4917_v31 = vld [vmem:[#allocation15_spill] sm:$0xff] }
 0x1e9   : > { %1952 = vperm.xlu1 %3004, %v1329_v52   ;;  %1947 = vperm.xlu0 %3003, %v1328_v3   ;;  %v4918_v3 = vld [vmem:[#allocation16_spill] sm:$0xff] }
 0x1ed   : > { %1962 = vperm.xlu1 %3004, %v1331_v34   ;;  %1957 = vperm.xlu0 %3003, %v1330_v55   ;;  %v4919_v55 = vld [vmem:[#allocation18_spill] sm:$0xff] }
 0x1f1   : > { %1972 = vperm.xlu1 %3004, %v1333_v12   ;;  %1967 = vperm.xlu0 %3003, %v1332_v22   ;;  %v4920_v22 = vld [vmem:[#allocation17_spill] sm:$0xff] }
 0x224   : > { %v1347_v51 = vpop.permute.xlu1 %1346  ;;  %v1337_v28 = vpop.permute.xlu0 %1336 }
 0x225   : > { %v3881_v8 = vadd.f32 %v1337_v28, %v4914_v29  ;;  %v3884_v0 = vadd.f32 %v1337_v28, %v4915_v43  ;;  %v3887_v36 = vadd.f32 %v1337_v28, %v4916_v21  ;;  %v3890_v52 = vadd.f32 %v1337_v28, %v4917_v31  ;;  %v4921_v29 = vld [vmem:[#allocation19_spill] sm:$0xff]  ;;  %v4922_v43 = vld [vmem:[#allocation20_spill] sm:$0xff]  ;;  %v4923_v21 = vld [vmem:[#allocation22_spill] sm:$0xff] }
 0x226   : > { %v3905_v25 = vadd.f32 %v1347_v51, %v4922_v43  ;;  %v3908_v37 = vadd.f32 %v1347_v51, %v4923_v21  ;;  %v4924_v28 = vld [vmem:[#allocation21_spill] sm:$0xff] }
 0x227   : > { %v3911_v31 = vadd.f32 %v1347_v51, %v4924_v28 }
 0x228   : > { %v1352_v58 = vpop.permute.xlu1 %1351  ;;  %v1342_v30 = vpop.permute.xlu0 %1341 }
 0x229   : > { %v3893_v34 = vadd.f32 %v1342_v30, %v4918_v3  ;;  %v3896_v12 = vadd.f32 %v1342_v30, %v4919_v55  ;;  %v3899_v39 = vadd.f32 %v1342_v30, %v4920_v22  ;;  %v3902_v38 = vadd.f32 %v1342_v30, %v4921_v29  ;;  %v4925_v3 = vld [vmem:[#allocation23_spill] sm:$0xff] }
 0x22a   : > { %v3914_v26 = vadd.f32 %v1347_v51, %v4925_v3  ;;  %v3925_v28 = vadd.f32 %v1352_v58, %v4926_v45  ;;  %v3928_v51 = vadd.f32 %v1352_v58, %v4927_v27  ;;  %v4928_v3 = vld [vmem:[#allocation25_spill] sm:$0xff]  ;;  %v3934_v20 = vadd.f32 %v1352_v58, %v4929_v48 }
 0x22b   : > { %v1406_v55 = vadd.f32 %v3893_v34, %v3881_v8  ;;  %v1419_v22 = vadd.f32 %v3896_v12, %v3884_v0  ;;  %v1432_v30 = vadd.f32 %v3899_v39, %v3887_v36  ;;  %v1445_v29 = vadd.f32 %v3902_v38, %v3890_v52 }
 0x22c   : > { %v1362_v43 = vpop.permute.xlu1 %1361  ;;  %v1357_v21 = vpop.permute.xlu0 %1356  ;;  %v3931_v32 = vadd.f32 %v1352_v58, %v4928_v3 }
 0x22d   : > { %v1407_v41 = vadd.f32 %v1406_v55, %v3905_v25  ;;  %v1420_v56 = vadd.f32 %v1419_v22, %v3908_v37  ;;  %v1433_v44 = vadd.f32 %v1432_v30, %v3911_v31  ;;  %v1446_v62 = vadd.f32 %v1445_v29, %v3914_v26 }
 0x22e   : > { %v3941_v45 = vadd.f32 %v1357_v21, %v4930_v46  ;;  %v3944_v27 = vadd.f32 %v1357_v21, %v4931_v47  ;;  %v3947_v3 = vadd.f32 %v1357_v21, %v4932_v50  ;;  %v3950_v48 = vadd.f32 %v1357_v21, %v4933_v49  ;;  %v4934_v46 = vld [vmem:[#allocation32_spill] sm:$0xff]  ;;  %v4935_v47 = vld [vmem:[#allocation34_spill] sm:$0xff]  ;;  %v4936_v50 = vld [vmem:[#allocation33_spill] sm:$0xff] }
 0x22f   : > { %v1408_v58 = vadd.f32 %v1407_v41, %v3925_v28  ;;  %v1421_v55 = vadd.f32 %v1420_v56, %v3928_v51  ;;  %v1434_v22 = vadd.f32 %v1433_v44, %v3931_v32  ;;  %v1447_v30 = vadd.f32 %v1446_v62, %v3934_v20  ;;  %v4937_v49 = vld [vmem:[#allocation35_spill] sm:$0xff] }
 0x230   : > { %v1367_v29 = vpop.permute.xlu0 %1366  ;;  %v3957_v60 = vadd.f32 %v1362_v43, %v4934_v46  ;;  %v3960_v33 = vadd.f32 %v1362_v43, %v4935_v47  ;;  %v3963_v54 = vadd.f32 %v1362_v43, %v4936_v50  ;;  %v3966_v21 = vadd.f32 %v1362_v43, %v4937_v49  ;;  %v1372_v23 = vpop.permute.xlu1 %1371  ;;  %v4938_v46 = vld [vmem:[#allocation36_spill] sm:$0xff]  ;;  %v4941_v50 = vld [vmem:[#allocation39_spill] sm:$0xff] }
 0x231   : > { %v1409_v41 = vadd.f32 %v1408_v58, %v3941_v45  ;;  %v1422_v56 = vadd.f32 %v1421_v55, %v3944_v27  ;;  %v1435_v44 = vadd.f32 %v1434_v22, %v3947_v3  ;;  %v1448_v62 = vadd.f32 %v1447_v30, %v3950_v48  ;;  %v4942_v22 = vld [vmem:[#allocation40_spill] sm:$0xff]  ;;  %v4943_v30 = vld [vmem:[#allocation42_spill] sm:$0xff] }
 0x232   : > { %v1398_v53 = vadd.f32 %v1367_v29, %v4938_v46  ;;  %v1399_v47 = vadd.f32 %v1367_v29, %v4939_v24  ;;  %v1400_v59 = vadd.f32 %v1367_v29, %v4940_v57  ;;  %v1401_v35 = vadd.f32 %v1367_v29, %v4941_v50 }
 0x233   : > { %v1410_v43 = vadd.f32 %v1409_v41, %v3957_v60  ;;  %v1423_v49 = vadd.f32 %v1422_v56, %v3960_v33  ;;  %v1436_v58 = vadd.f32 %v1435_v44, %v3963_v54  ;;  %v1449_v55 = vadd.f32 %v1448_v62, %v3966_v21 }
 0x234   : > { %v1402_v40 = vadd.f32 %v1372_v23, %v4942_v22  ;;  %v1403_v61 = vadd.f32 %v1372_v23, %v4943_v30  ;;  %v1404_v46 = vadd.f32 %v1372_v23, %v4944_v13  ;;  %v1405_v24 = vadd.f32 %v1372_v23, %v4945_v63  ;;  %v1631_v14 = vpop.permute.xlu1 %1630 }
 0x235   : > { %v1411_v42 = vadd.f32 %v1410_v43, %v1398_v53  ;;  %v1424_v57 = vadd.f32 %v1423_v49, %v1399_v47  ;;  %v1437_v1 = vadd.f32 %v1436_v58, %v1400_v59  ;;  %v1450_v29 = vadd.f32 %v1449_v55, %v1401_v35 }
 0x237   : > { %v1412_v50 = vadd.f32 %v1411_v42, %v1402_v40  ;;  %v1425_v41 = vadd.f32 %v1424_v57, %v1403_v61  ;;  %v1438_v5 = vadd.f32 %v1437_v1, %v1404_v46  ;;  %v1451_v56 = vadd.f32 %v1450_v29, %v1405_v24 }
 0x239   : > { %v1413_v17 = vrot.slane %v1412_v50, 4  ;;  %v1426_v44 = vrot.slane %v1425_v41, 4  ;;  %v1439_v16 = vrot.slane %v1438_v5, 4  ;;  %v1452_v62 = vrot.slane %v1451_v56, 4 }
 0x23b   : > { %v1414_v2 = vadd.f32 %v1413_v17, %v1412_v50  ;;  %v1427_v22 = vadd.f32 %v1426_v44, %v1425_v41  ;;  %v1440_v9 = vadd.f32 %v1439_v16, %v1438_v5  ;;  %v1453_v30 = vadd.f32 %v1452_v62, %v1451_v56 }
 0x23d   : > { %v1415_v4 = vrot.slane %v1414_v2, 2  ;;  %v1428_v13 = vrot.slane %v1427_v22, 2  ;;  %v1441_v19 = vrot.slane %v1440_v9, 2  ;;  %v1454_v63 = vrot.slane %v1453_v30, 2 }
 0x23f   : > { %v1416_v23 = vadd.f32 %v1415_v4, %v1414_v2  ;;  %v1429_v43 = vadd.f32 %v1428_v13, %v1427_v22  ;;  %v1442_v49 = vadd.f32 %v1441_v19, %v1440_v9  ;;  %v1455_v58 = vadd.f32 %v1454_v63, %v1453_v30 }
 0x241   : > { %v1417_v42 = vrot.slane %v1416_v23, 1  ;;  %v1430_v55 = vrot.slane %v1429_v43, 1  ;;  %v1443_v1 = vrot.slane %v1442_v49, 1  ;;  %v1456_v57 = vrot.slane %v1455_v58, 1 }
 0x243   : > { %v1431_v29 = vadd.f32 %v1430_v55, %v1429_v43  ;;  %v1457_v15 = vadd.f32 %v1456_v57, %v1455_v58  ;;  %v1418_v18 = vadd.f32 %v1417_v42, %v1416_v23  ;;  %v1444_v11 = vadd.f32 %v1443_v1, %v1442_v49 }
 0x245   : > { %v1460_v17 = vmul.f32 0.015625, %v1431_v29  ;;  %v1462_v50 = vmul.f32 0.015625, %v1457_v15  ;;  %v1459_v16 = vmul.f32 0.015625, %v1418_v18  ;;  %v1461_v5 = vmul.f32 0.015625, %v1444_v11 }
 0x247   : > { %v3985_v41 = vsub.f32 %v3884_v0, %v1460_v17  ;;  %v3988_v4 = vsub.f32 %v3890_v52, %v1462_v50  ;;  %v3991_v19 = vsub.f32 %v3928_v51, %v1460_v17  ;;  %v3994_v2 = vsub.f32 %v3934_v20, %v1462_v50 }
 0x248   : > { %v3996_v9 = vsub.f32 %v1398_v53, %v1459_v16  ;;  %v3998_v56 = vsub.f32 %v1399_v47, %v1460_v17  ;;  %v4000_v44 = vsub.f32 %v1400_v59, %v1461_v5  ;;  %v4002_v15 = vsub.f32 %v1401_v35, %v1462_v50 }
 0x249   : > { %v4004_v11 = vsub.f32 %v1402_v40, %v1459_v16  ;;  %v4006_v18 = vsub.f32 %v1403_v61, %v1460_v17  ;;  %v4009_v0 = vsub.f32 %v3881_v8, %v1459_v16  ;;  %v4012_v52 = vsub.f32 %v3887_v36, %v1461_v5 }
 0x24a   : > { %v4015_v20 = vsub.f32 %v3893_v34, %v1459_v16  ;;  %v4018_v53 = vsub.f32 %v3896_v12, %v1460_v17  ;;  %v4021_v59 = vsub.f32 %v3899_v39, %v1461_v5  ;;  %v4024_v40 = vsub.f32 %v3902_v38, %v1462_v50 }
 0x24b   : > { %v4026_v61 = vsub.f32 %v1404_v46, %v1461_v5  ;;  %v4028_v35 = vsub.f32 %v1405_v24, %v1462_v50  ;;  %v4031_v8 = vsub.f32 %v3905_v25, %v1459_v16  ;;  %v4034_v36 = vsub.f32 %v3908_v37, %v1460_v17 }
 0x24c   : > { %v4037_v34 = vsub.f32 %v3911_v31, %v1461_v5  ;;  %v4040_v12 = vsub.f32 %v3914_v26, %v1462_v50  ;;  %v4043_v39 = vsub.f32 %v3925_v28, %v1459_v16  ;;  %v4046_v38 = vsub.f32 %v3931_v32, %v1461_v5 }
 0x24d   : > { %v1495_v51 = vmul.f32 %v4009_v0, %v4009_v0  ;;  %v1496_v25 = vmul.f32 %v3985_v41, %v3985_v41  ;;  %v1497_v37 = vmul.f32 %v4012_v52, %v4012_v52  ;;  %v1498_v31 = vmul.f32 %v3988_v4, %v3988_v4 }
 0x24e   : > { %v1499_v26 = vmul.f32 %v4015_v20, %v4015_v20  ;;  %v1500_v28 = vmul.f32 %v4018_v53, %v4018_v53  ;;  %v1501_v32 = vmul.f32 %v4021_v59, %v4021_v59  ;;  %v1502_v47 = vmul.f32 %v4024_v40, %v4024_v40 }
 0x24f   : > { %v4065_v46 = vsub.f32 %v3941_v45, %v1459_v16  ;;  %v4068_v24 = vsub.f32 %v3944_v27, %v1460_v17  ;;  %v4071_v62 = vsub.f32 %v3947_v3, %v1461_v5  ;;  %v4074_v22 = vsub.f32 %v3950_v48, %v1462_v50 }
 0x250   : > { %v4077_v30 = vsub.f32 %v3957_v60, %v1459_v16  ;;  %v4080_v13 = vsub.f32 %v3960_v33, %v1460_v17  ;;  %v4083_v63 = vsub.f32 %v3963_v54, %v1461_v5  ;;  %v4086_v45 = vsub.f32 %v3966_v21, %v1462_v50 }
 0x251   : > { %v1503_v27 = vmul.f32 %v4031_v8, %v4031_v8  ;;  %v1504_v3 = vmul.f32 %v4034_v36, %v4034_v36  ;;  %v1505_v48 = vmul.f32 %v4037_v34, %v4037_v34  ;;  %v1506_v60 = vmul.f32 %v4040_v12, %v4040_v12 }
 0x252   : > { %v1527_v33 = vadd.f32 %v1499_v26, %v1495_v51  ;;  %v1540_v23 = vadd.f32 %v1500_v28, %v1496_v25  ;;  %v1553_v43 = vadd.f32 %v1501_v32, %v1497_v37  ;;  %v1566_v54 = vadd.f32 %v1502_v47, %v1498_v31 }
 0x253   : > { %v1507_v21 = vmul.f32 %v4043_v39, %v4043_v39  ;;  %v1508_v49 = vmul.f32 %v3991_v19, %v3991_v19  ;;  %v1509_v58 = vmul.f32 %v4046_v38, %v4046_v38  ;;  %v1510_v42 = vmul.f32 %v3994_v2, %v3994_v2 }
 0x254   : > { %v1528_v55 = vadd.f32 %v1527_v33, %v1503_v27  ;;  %v1541_v1 = vadd.f32 %v1540_v23, %v1504_v3  ;;  %v1554_v57 = vadd.f32 %v1553_v43, %v1505_v48  ;;  %v1567_v29 = vadd.f32 %v1566_v54, %v1506_v60 }
 0x255   : > { %v1511_v17 = vmul.f32 %v4065_v46, %v4065_v46  ;;  %v1512_v50 = vmul.f32 %v4068_v24, %v4068_v24  ;;  %v1513_v16 = vmul.f32 %v4071_v62, %v4071_v62  ;;  %v1514_v5 = vmul.f32 %v4074_v22, %v4074_v22 }
 0x256   : > { %v1529_v51 = vadd.f32 %v1528_v55, %v1507_v21  ;;  %v1542_v25 = vadd.f32 %v1541_v1, %v1508_v49  ;;  %v1555_v37 = vadd.f32 %v1554_v57, %v1509_v58  ;;  %v1568_v31 = vadd.f32 %v1567_v29, %v1510_v42 }
 0x257   : > { %v1515_v26 = vmul.f32 %v4077_v30, %v4077_v30  ;;  %v1516_v28 = vmul.f32 %v4080_v13, %v4080_v13  ;;  %v1517_v32 = vmul.f32 %v4083_v63, %v4083_v63  ;;  %v1518_v47 = vmul.f32 %v4086_v45, %v4086_v45 }
 0x258   : > { %v1530_v27 = vadd.f32 %v1529_v51, %v1511_v17  ;;  %v1543_v3 = vadd.f32 %v1542_v25, %v1512_v50  ;;  %v1556_v48 = vadd.f32 %v1555_v37, %v1513_v16  ;;  %v1569_v60 = vadd.f32 %v1568_v31, %v1514_v5 }
 0x259   : > { %v1519_v33 = vmul.f32 %v3996_v9, %v3996_v9  ;;  %v1520_v23 = vmul.f32 %v3998_v56, %v3998_v56  ;;  %v1521_v43 = vmul.f32 %v4000_v44, %v4000_v44  ;;  %v1522_v54 = vmul.f32 %v4002_v15, %v4002_v15 }
 0x25a   : > { %v1531_v21 = vadd.f32 %v1530_v27, %v1515_v26  ;;  %v1544_v49 = vadd.f32 %v1543_v3, %v1516_v28  ;;  %v1557_v58 = vadd.f32 %v1556_v48, %v1517_v32  ;;  %v1570_v42 = vadd.f32 %v1569_v60, %v1518_v47 }
 0x25b   : > { %v1523_v55 = vmul.f32 %v4004_v11, %v4004_v11  ;;  %v1524_v1 = vmul.f32 %v4006_v18, %v4006_v18  ;;  %v1525_v57 = vmul.f32 %v4026_v61, %v4026_v61  ;;  %v1526_v29 = vmul.f32 %v4028_v35, %v4028_v35 }
 0x25c   : > { %v1532_v17 = vadd.f32 %v1531_v21, %v1519_v33  ;;  %v1545_v50 = vadd.f32 %v1544_v49, %v1520_v23  ;;  %v1558_v16 = vadd.f32 %v1557_v58, %v1521_v43  ;;  %v1571_v5 = vadd.f32 %v1570_v42, %v1522_v54  ;;  %v1626_v49 = vpop.permute.xlu0 %1625 }
 0x25e   : > { %v1533_v51 = vadd.f32 %v1532_v17, %v1523_v55  ;;  %v1546_v25 = vadd.f32 %v1545_v50, %v1524_v1  ;;  %v1559_v37 = vadd.f32 %v1558_v16, %v1525_v57  ;;  %v1572_v31 = vadd.f32 %v1571_v5, %v1526_v29  ;;  %v4136_v16 = vpop.permute.xlu1 %1702 }
 0x260   : > { %v1534_v26 = vrot.slane %v1533_v51, 4  ;;  %v1547_v28 = vrot.slane %v1546_v25, 4  ;;  %v1560_v32 = vrot.slane %v1559_v37, 4  ;;  %v1573_v47 = vrot.slane %v1572_v31, 4 }
 0x262   : > { %v1535_v27 = vadd.f32 %v1534_v26, %v1533_v51  ;;  %v1548_v3 = vadd.f32 %v1547_v28, %v1546_v25  ;;  %v1561_v48 = vadd.f32 %v1560_v32, %v1559_v37  ;;  %v1574_v60 = vadd.f32 %v1573_v47, %v1572_v31  ;;  %v4138_v31 = vpop.permute.xlu0 %1697  ;;  %v1641_v28 = vpop.permute.xlu1 %1640 }
 0x264   : > { %v1536_v7 = vrot.slane %v1535_v27, 2  ;;  %v1549_v10 = vrot.slane %v1548_v3, 2  ;;  %v1562_v6 = vrot.slane %v1561_v48, 2  ;;  %v1575_v33 = vrot.slane %v1574_v60, 2 }
 0x266   : > { %v1537_v23 = vadd.f32 %v1536_v7, %v1535_v27  ;;  %v1550_v43 = vadd.f32 %v1549_v10, %v1548_v3  ;;  %v1563_v54 = vadd.f32 %v1562_v6, %v1561_v48  ;;  %v1576_v21 = vadd.f32 %v1575_v33, %v1574_v60  ;;  %v1636_v32 = vpop.permute.xlu0 %1635  ;;  %v1713_v47 = vpop.permute.xlu1 %1712 }
 0x268   : > { %v1538_v58 = vrot.slane %v1537_v23, 1  ;;  %v1551_v42 = vrot.slane %v1550_v43, 1  ;;  %v1564_v55 = vrot.slane %v1563_v54, 1  ;;  %v1577_v1 = vrot.slane %v1576_v21, 1 }
 0x26a   : > { %v1539_v57 = vadd.f32 %v1538_v58, %v1537_v23  ;;  %v1552_v29 = vadd.f32 %v1551_v42, %v1550_v43  ;;  %v1565_v17 = vadd.f32 %v1564_v55, %v1563_v54  ;;  %v1578_v50 = vadd.f32 %v1577_v1, %v1576_v21  ;;  %v1708_v27 = vpop.permute.xlu0 %1707  ;;  %v1651_v42 = vpop.permute.xlu1 %1650 }
 0x26c   : > { %v1579_v5 = vmul.f32 0.015625, %v1539_v57  ;;  %v1580_v51 = vmul.f32 0.015625, %v1552_v29  ;;  %v1581_v25 = vmul.f32 0.015625, %v1565_v17  ;;  %v1582_v37 = vmul.f32 0.015625, %v1578_v50 }
 0x26e   : > { %v1583_v7 = vadd.f32 1e-05, %v1579_v5  ;;  %v1584_v6 = vadd.f32 1e-05, %v1580_v51  ;;  %v1585_v10 = vadd.f32 1e-05, %v1581_v25  ;;  %v1646_v29 = vpop.permute.xlu0 %1645 }
 0x26f   : > { %v1586_v26 = vadd.f32 1e-05, %v1582_v37 }
 0x270   : > { %3013 = vrsqrt.f32 %v1583_v7 }
 0x271   : > { %3015 = vrsqrt.f32 %v1584_v6 }
 0x272   : > { %3017 = vrsqrt.f32 %v1585_v10 }
 0x273   : > { %3019 = vrsqrt.f32 %v1586_v26 }
 0x27a   : > { %v4140_v3 = vpop.eup %3013 }
 0x27b   : > { %v4142_v48 = vpop.eup %3015  ;;  %v1595_v60 = vmul.f32 %v4140_v3, %v4015_v20  ;;  %v1591_v33 = vmul.f32 %v4140_v3, %v4009_v0  ;;  %v1603_v23 = vmul.f32 %v4140_v3, %v4043_v39  ;;  %v1599_v43 = vmul.f32 %v4140_v3, %v4031_v8 }
 0x27c   : > { %v4152_v54 = vpop.eup %3017  ;;  %v1596_v21 = vmul.f32 %v4142_v48, %v4018_v53  ;;  %v1592_v58 = vmul.f32 %v4142_v48, %v3985_v41  ;;  %v1604_v20 = vmul.f32 %v4142_v48, %v3991_v19  ;;  %v1600_v0 = vmul.f32 %v4142_v48, %v4034_v36 }
 0x27d   : > { %v4162_v55 = vpop.eup %3019  ;;  %v1597_v8 = vmul.f32 %v4152_v54, %v4021_v59  ;;  %v1667_v39 = vmul.f32 %v1631_v14, %v1595_v60  ;;  %v1593_v1 = vmul.f32 %v4152_v54, %v4012_v52  ;;  %v1663_v53 = vmul.f32 %v1626_v49, %v1591_v33 }
 0x27e   : > { %v1598_v41 = vmul.f32 %v4162_v55, %v4024_v40  ;;  %v4170_v57 = vmul.f32 %v1631_v14, %v1596_v21  ;;  %v1594_v19 = vmul.f32 %v4162_v55, %v3988_v4  ;;  %v4174_v36 = vmul.f32 %v1626_v49, %v1592_v58 }
 0x27f   : > { %v1669_v17 = vmul.f32 %v1631_v14, %v1597_v8  ;;  %v1665_v50 = vmul.f32 %v1626_v49, %v1593_v1  ;;  %v4177_v59 = vadd.f32 %v4136_v16, %v1667_v39  ;;  %v4180_v5 = vadd.f32 %v4138_v31, %v1663_v53 }
 0x280   : > { %v4182_v52 = vmul.f32 %v1631_v14, %v1598_v41  ;;  %v4184_v51 = vmul.f32 %v1626_v49, %v1594_v19  ;;  %v1605_v40 = vmul.f32 %v4152_v54, %v4046_v38  ;;  %v1606_v4 = vmul.f32 %v4162_v55, %v3994_v2  ;;  %v1723_v38 = vpop.permute.xlu1 %1722 }
 0x281   : > { %v4191_v25 = vadd.f32 %v4136_v16, %v1669_v17  ;;  %v4194_v37 = vadd.f32 %v4138_v31, %v1665_v50  ;;  %v1675_v7 = vmul.f32 %v1641_v28, %v1603_v23  ;;  %v1676_v6 = vmul.f32 %v1641_v28, %v1604_v20 }
 0x282   : > { %v1677_v10 = vmul.f32 %v1641_v28, %v1605_v40  ;;  %v1678_v26 = vmul.f32 %v1641_v28, %v1606_v4  ;;  %v1601_v14 = vmul.f32 %v4152_v54, %v4037_v34  ;;  %v1602_v49 = vmul.f32 %v4162_v55, %v4040_v12  ;;  %v1718_v28 = vpop.permute.xlu0 %1717 }
 0x283   : > { %v1671_v60 = vmul.f32 %v1636_v32, %v1599_v43  ;;  %v1672_v33 = vmul.f32 %v1636_v32, %v1600_v0  ;;  %v4200_v2 = vadd.f32 %v1713_v47, %v1675_v7  ;;  %v4202_v21 = vadd.f32 %v1713_v47, %v1676_v6 }
 0x284   : > { %v1673_v58 = vmul.f32 %v1636_v32, %v1601_v14  ;;  %v1674_v8 = vmul.f32 %v1636_v32, %v1602_v49  ;;  %v4204_v39 = vadd.f32 %v1713_v47, %v1677_v10  ;;  %v4206_v23 = vadd.f32 %v1713_v47, %v1678_v26 }
 0x285   : > { %v4208_v20 = vadd.f32 %v1708_v27, %v1671_v60  ;;  %v4210_v34 = vadd.f32 %v1708_v27, %v1672_v33  ;;  %v1611_v12 = vmul.f32 %v4140_v3, %v4077_v30  ;;  %v1612_v43 = vmul.f32 %v4142_v48, %v4080_v13 }
 0x286   : > { %v4216_v0 = vadd.f32 %v1708_v27, %v1673_v58  ;;  %v4218_v1 = vadd.f32 %v1708_v27, %v1674_v8  ;;  %v1613_v32 = vmul.f32 %v4152_v54, %v4083_v63  ;;  %v1614_v47 = vmul.f32 %v4162_v55, %v4086_v45  ;;  %v1661_v63 = vpop.permute.xlu1 %1660 }
 0x287   : > { %v1683_v53 = vmul.f32 %v1651_v42, %v1611_v12  ;;  %v1684_v41 = vmul.f32 %v1651_v42, %v1612_v43  ;;  %v1607_v19 = vmul.f32 %v4140_v3, %v4065_v46  ;;  %v1608_v30 = vmul.f32 %v4142_v48, %v4068_v24 }
 0x288   : > { %v1685_v17 = vmul.f32 %v1651_v42, %v1613_v32  ;;  %v1686_v13 = vmul.f32 %v1651_v42, %v1614_v47  ;;  %v1609_v27 = vmul.f32 %v4152_v54, %v4071_v62  ;;  %v1610_v50 = vmul.f32 %v4162_v55, %v4074_v22  ;;  %v1656_v42 = vpop.permute.xlu0 %1655 }
 0x289   : > { %v1679_v40 = vmul.f32 %v1646_v29, %v1607_v19  ;;  %v1680_v4 = vmul.f32 %v1646_v29, %v1608_v30  ;;  %v4232_v45 = vadd.f32 %v1723_v38, %v1683_v53  ;;  %v4234_v7 = vadd.f32 %v1723_v38, %v1684_v41 }
 0x28a   : > { %v1681_v6 = vmul.f32 %v1646_v29, %v1609_v27  ;;  %v1682_v46 = vmul.f32 %v1646_v29, %v1610_v50  ;;  %v4236_v10 = vadd.f32 %v1723_v38, %v1685_v17  ;;  %v4238_v24 = vadd.f32 %v1723_v38, %v1686_v13 }
 0x28b   : > { %v4240_v26 = vadd.f32 %v1718_v28, %v1679_v40  ;;  %v4242_v62 = vadd.f32 %v1718_v28, %v1680_v4  ;;  %v1619_v22 = vmul.f32 %v4140_v3, %v4004_v11  ;;  %v1620_v14 = vmul.f32 %v4142_v48, %v4006_v18 }
 0x28c   : > { %v4248_v49 = vadd.f32 %v1718_v28, %v1681_v6  ;;  %v4250_v60 = vadd.f32 %v1718_v28, %v1682_v46  ;;  %v1621_v29 = vmul.f32 %v4152_v54, %v4026_v61  ;;  %v1622_v38 = vmul.f32 %v4162_v55, %v4028_v35  ;;  %v1733_v61 = vpop.permute.xlu1 %1732 }
 0x28d   : > { %v1691_v33 = vmul.f32 %v1661_v63, %v1619_v22  ;;  %v1692_v58 = vmul.f32 %v1661_v63, %v1620_v14  ;;  %v1615_v8 = vmul.f32 %v4140_v3, %v3996_v9  ;;  %v1616_v11 = vmul.f32 %v4142_v48, %v3998_v56  ;;  %v1728_v48 = vpop.permute.xlu0 %1727 }
 0x28e   : > { %v1693_v12 = vmul.f32 %v1661_v63, %v1621_v29  ;;  %v1694_v18 = vmul.f32 %v1661_v63, %v1622_v38  ;;  %v1617_v28 = vmul.f32 %v4152_v54, %v4000_v44  ;;  %v1618_v43 = vmul.f32 %v4162_v55, %v4002_v15 }
 0x28f   : > { %v1687_v32 = vmul.f32 %v1656_v42, %v1615_v8  ;;  %v1688_v47 = vmul.f32 %v1656_v42, %v1616_v11  ;;  %v4264_v35 = vadd.f32 %v1733_v61, %v1691_v33  ;;  %v4266_v53 = vadd.f32 %v1733_v61, %v1692_v58 }
 0x290   : > { %v1689_v41 = vmul.f32 %v1656_v42, %v1617_v28  ;;  %v1690_v9 = vmul.f32 %v1656_v42, %v1618_v43  ;;  %v4268_v3 = vadd.f32 %v1733_v61, %v1693_v12  ;;  %v4270_v56 = vadd.f32 %v1733_v61, %v1694_v18 }
 0x291   : > { %v4272_v19 = vadd.f32 %v1728_v48, %v1687_v32  ;;  %v4274_v44 = vadd.f32 %v1728_v48, %v1688_v47  ;;  %v1736_v15 = vadd.f32 %v4138_v31, %v4174_v36  ;;  %v1740_v54 = vadd.f32 %v4136_v16, %v4170_v57 }
 0x292   : > { %v4280_v55 = vadd.f32 %v1728_v48, %v1689_v41  ;;  %v4282_v30 = vadd.f32 %v1728_v48, %v1690_v9  ;;  %v1738_v17 = vadd.f32 %v4138_v31, %v4184_v51  ;;  %v1742_v13 = vadd.f32 %v4136_v16, %v4182_v52 }
 0x293   : > { %vm1768_vm1 = vcmp.ge.f32.partialorder %v1736_v15, 0.0  ;;  %vm1772_vm2 = vcmp.ge.f32.partialorder %v1740_v54, 0.0  ;;  %v1800_v27 = vmul.f32 0.01, %v1736_v15  ;;  %v1804_v50 = vmul.f32 0.01, %v1740_v54 }
 0x294   : > { %vm1770_vm3 = vcmp.ge.f32.partialorder %v1738_v17, 0.0  ;;  %vm1774_vm4 = vcmp.ge.f32.partialorder %v1742_v13, 0.0  ;;  %v1802_v36 = vmul.f32 0.01, %v1738_v17  ;;  %v1806_v63 = vmul.f32 0.01, %v1742_v13 }
 0x295   : > { %v1832_v40 = vsel %vm1768_vm1, %v1736_v15, %v1800_v27  ;;  %v1836_v57 = vsel %vm1772_vm2, %v1740_v54, %v1804_v50  ;;  %vm1767_vm5 = vcmp.ge.f32.partialorder %v4180_v5, 0.0  ;;  %vm1771_vm6 = vcmp.ge.f32.partialorder %v4177_v59, 0.0 }
 0x296   : > { %v1880_v4 = vpack.c.bf16 %v1836_v57, %v1832_v40  ;;  %v1834_v6 = vsel %vm1770_vm3, %v1738_v17, %v1802_v36  ;;  %v1838_v31 = vsel %vm1774_vm4, %v1742_v13, %v1806_v63  ;;  %v1799_v51 = vmul.f32 0.01, %v4180_v5 }
 0x297   : > { %v1882_v16 = vpack.c.bf16 %v1838_v31, %v1834_v6  ;;  %v1803_v52 = vmul.f32 0.01, %v4177_v59  ;;  %vm1769_vm7 = vcmp.ge.f32.partialorder %v4194_v37, 0.0  ;;  %vm1773_vm8 = vcmp.ge.f32.partialorder %v4191_v25, 0.0 }
 0x298   : > { %2040 = vmatprep.subr.bf16.mxu0 %v1880_v4  ;;  %v1831_v46 = vsel %vm1767_vm5, %v4180_v5, %v1799_v51  ;;  %v1801_v42 = vmul.f32 0.01, %v4194_v37  ;;  %v1805_v22 = vmul.f32 0.01, %v4191_v25  ;;  %vm1776_vm9 = vcmp.ge.f32.partialorder %v4210_v34, 0.0 }
 0x299   : > { %2153 = vmatprep.subr.bf16.mxu1 %v1882_v16  ;;  %v1835_v14 = vsel %vm1771_vm6, %v4177_v59, %v1803_v52  ;;  %vm1780_vm10 = vcmp.ge.f32.partialorder %v4202_v21, 0.0  ;;  %v1808_v29 = vmul.f32 0.01, %v4210_v34  ;;  %v1812_v38 = vmul.f32 0.01, %v4202_v21 }
 0x29a   : > { %v1879_v33 = vpack.c.bf16 %v1835_v14, %v1831_v46  ;;  %v1833_v58 = vsel %vm1769_vm7, %v4194_v37, %v1801_v42  ;;  %v1837_v5 = vsel %vm1773_vm8, %v4191_v25, %v1805_v22  ;;  %vm1778_vm11 = vcmp.ge.f32.partialorder %v4218_v1, 0.0 }
 0x29b   : > { %v1881_v8 = vpack.c.bf16 %v1837_v5, %v1833_v58  ;;  %v1840_v11 = vsel %vm1776_vm9, %v4210_v34, %v1808_v29  ;;  %v1844_v12 = vsel %vm1780_vm10, %v4202_v21, %v1812_v38  ;;  %vm1782_vm12 = vcmp.ge.f32.partialorder %v4206_v23, 0.0 }
 0x29c   : > { %2041 = vmatpush1.bf16.msra.mxu0 %v1879_v33  ;;  %v1884_v59 = vpack.c.bf16 %v1844_v12, %v1840_v11  ;;  %v1810_v18 = vmul.f32 0.01, %v4218_v1  ;;  %v1814_v28 = vmul.f32 0.01, %v4206_v23  ;;  %vm1775_vm13 = vcmp.ge.f32.partialorder %v4208_v20, 0.0  ;;  %v3010_v11 = vld [vmem:[%s4732_s4 + $0x28] sm:$0xff]  }
 0x29d   : > { %2154 = vmatpush1.bf16.msra.mxu1 %v1881_v8  ;;  %vm1779_vm14 = vcmp.ge.f32.partialorder %v4200_v2, 0.0  ;;  %v1807_v25 = vmul.f32 0.01, %v4208_v20  ;;  %v1811_v37 = vmul.f32 0.01, %v4200_v2  ;;  %vm1777_vm15 = vcmp.ge.f32.partialorder %v4216_v0, 0.0 }
 0x29e   : > { %2042 = vmatprep.subr.bf16.mxu0 %v1884_v59  ;;  %v1842_v21 = vsel %vm1778_vm11, %v4218_v1, %v1810_v18  ;;  %v1846_v34 = vsel %vm1782_vm12, %v4206_v23, %v1814_v28  ;;  %vm1781_vm0 = vcmp.ge.f32.partialorder %v4204_v39, 0.0  ;;  %v1809_v43 = vmul.f32 0.01, %v4216_v0  ;;  %v3009_v8 = vld [vmem:[%s4732_s4 + $0x20] sm:$0xff]   ;;  %v3011_v12 = vld [vmem:[%s4732_s4 + $0x30] sm:$0xff]   ;;  %v3012_v59 = vld [vmem:[%s4732_s4 + $0x38] sm:$0xff]  }
 0x29f   : > { %v1886_v61 = vpack.c.bf16 %v1846_v34, %v1842_v21  ;;  %v1839_v32 = vsel %vm1775_vm13, %v4208_v20, %v1807_v25  ;;  %v1843_v47 = vsel %vm1779_vm14, %v4200_v2, %v1811_v37  ;;  %v1813_v41 = vmul.f32 0.01, %v4204_v39  ;;  %v4947_v18 = vld [vmem:[#allocation11_spill] sm:$0xff]  ;;  %v4948_v25 = vld [vmem:[#allocation10_spill] sm:$0xff] }
 0x2a0   : > { %v1883_v9 = vpack.c.bf16 %v1843_v47, %v1839_v32  ;;  %v1841_v48 = vsel %vm1777_vm15, %v4216_v0, %v1809_v43  ;;  %vm1784_vm1 = vcmp.ge.f32.partialorder %v4242_v62, 0.0  ;;  %vm1788_vm2 = vcmp.ge.f32.partialorder %v4234_v7, 0.0 }
 0x2a1   : > { %2155 = vmatprep.subr.bf16.mxu1 %v1886_v61  ;;  %v1845_v23 = vsel %vm1781_vm0, %v4204_v39, %v1813_v41  ;;  %v1816_v1 = vmul.f32 0.01, %v4242_v62  ;;  %v1820_v15 = vmul.f32 0.01, %v4234_v7  ;;  %vm1786_vm3 = vcmp.ge.f32.partialorder %v4250_v60, 0.0 }
 0x2a2   : > { %2043 = vmatpush1.bf16.msra.mxu0 %v1883_v9  ;;  %v1885_v2 = vpack.c.bf16 %v1845_v23, %v1841_v48  ;;  %vm1790_vm4 = vcmp.ge.f32.partialorder %v4238_v24, 0.0  ;;  %v1818_v20 = vmul.f32 0.01, %v4250_v60  ;;  %v1822_v0 = vmul.f32 0.01, %v4238_v24  ;;  %v1898_v9 = vpop.permute.xlu0 %1897  ;;  %v1903_v23 = vpop.permute.xlu1 %1902 }
 0x2a3   : > { %v1848_v54 = vsel %vm1784_vm1, %v4242_v62, %v1816_v1  ;;  %v1852_v17 = vsel %vm1788_vm2, %v4234_v7, %v1820_v15  ;;  %vm1783_vm5 = vcmp.ge.f32.partialorder %v4240_v26, 0.0  ;;  %vm1787_vm6 = vcmp.ge.f32.partialorder %v4232_v45, 0.0 }
 0x2a4   : > { %2156 = vmatpush1.bf16.msra.mxu1 %v1885_v2  ;;  %v1888_v39 = vpack.c.bf16 %v1852_v17, %v1848_v54  ;;  %v1850_v13 = vsel %vm1786_vm3, %v4250_v60, %v1818_v20  ;;  %v1854_v27 = vsel %vm1790_vm4, %v4238_v24, %v1822_v0  ;;  %v1815_v50 = vmul.f32 0.01, %v4240_v26  ;;  %v4953_v54 = vld [vmem:[#allocation44_spill] sm:$0xff] }
 0x2a5   : > { %v1890_v36 = vpack.c.bf16 %v1854_v27, %v1850_v13  ;;  %v1819_v63 = vmul.f32 0.01, %v4232_v45  ;;  %vm1785_vm7 = vcmp.ge.f32.partialorder %v4248_v49, 0.0  ;;  %vm1789_vm8 = vcmp.ge.f32.partialorder %v4236_v10, 0.0 }
 0x2a6   : > { %2044 = vmatprep.subr.bf16.mxu0 %v1888_v39  ;;  %v1847_v7 = vsel %vm1783_vm5, %v4240_v26, %v1815_v50  ;;  %v1817_v62 = vmul.f32 0.01, %v4248_v49  ;;  %v1821_v40 = vmul.f32 0.01, %v4236_v10  ;;  %vm1792_vm9 = vcmp.ge.f32.partialorder %v4274_v44, 0.0 }
 0x2a7   : > { %2157 = vmatprep.subr.bf16.mxu1 %v1890_v36  ;;  %v1851_v24 = vsel %vm1787_vm6, %v4232_v45, %v1819_v63  ;;  %vm1796_vm10 = vcmp.ge.f32.partialorder %v4266_v53, 0.0  ;;  %v1824_v60 = vmul.f32 0.01, %v4274_v44  ;;  %v1828_v57 = vmul.f32 0.01, %v4266_v53  ;;  %v4954_v36 = vld [vmem:[#allocation46_spill] sm:$0xff] }
 0x2a8   : > { %v1887_v4 = vpack.c.bf16 %v1851_v24, %v1847_v7  ;;  %v1849_v26 = vsel %vm1785_vm7, %v4248_v49, %v1817_v62  ;;  %v1853_v6 = vsel %vm1789_vm8, %v4236_v10, %v1821_v40  ;;  %vm1794_vm11 = vcmp.ge.f32.partialorder %v4282_v30, 0.0  ;;  %v4955_v24 = vld [vmem:[#allocation45_spill] sm:$0xff] }
 0x2a9   : > { %v1889_v31 = vpack.c.bf16 %v1853_v6, %v1849_v26  ;;  %v1856_v51 = vsel %vm1792_vm9, %v4274_v44, %v1824_v60  ;;  %v1860_v16 = vsel %vm1796_vm10, %v4266_v53, %v1828_v57  ;;  %vm1798_vm12 = vcmp.ge.f32.partialorder %v4270_v56, 0.0 }
 0x2aa   : > { %2045 = vmatpush1.bf16.msra.mxu0 %v1887_v4  ;;  %v1892_v45 = vpack.c.bf16 %v1860_v16, %v1856_v51  ;;  %v1826_v52 = vmul.f32 0.01, %v4282_v30  ;;  %v1830_v46 = vmul.f32 0.01, %v4270_v56  ;;  %vm1791_vm13 = vcmp.ge.f32.partialorder %v4272_v19, 0.0  ;;  %v4956_v4 = vld [vmem:[#allocation48_spill] sm:$0xff] }
 0x2ab   : > { %2158 = vmatpush1.bf16.msra.mxu1 %v1889_v31  ;;  %vm1795_vm14 = vcmp.ge.f32.partialorder %v4264_v35, 0.0  ;;  %v1823_v10 = vmul.f32 0.01, %v4272_v19  ;;  %v1827_v49 = vmul.f32 0.01, %v4264_v35  ;;  %vm1793_vm15 = vcmp.ge.f32.partialorder %v4280_v55, 0.0 }
 0x2ac   : > { %2046 = vmatprep.subr.bf16.mxu0 %v1892_v45  ;;  %v1858_v53 = vsel %vm1794_vm11, %v4282_v30, %v1826_v52  ;;  %v1862_v44 = vsel %vm1798_vm12, %v4270_v56, %v1830_v46  ;;  %vm1797_vm0 = vcmp.ge.f32.partialorder %v4268_v3, 0.0  ;;  %v1825_v42 = vmul.f32 0.01, %v4280_v55  ;;  %v3005_v56 = vld [vmem:[%s4732_s4] sm:$0xff]   ;;  %v4957_v51 = vld [vmem:[#allocation47_spill] sm:$0xff] }
 0x2ad   : > { %v1894_v22 = vpack.c.bf16 %v1862_v44, %v1858_v53  ;;  %v1855_v14 = vsel %vm1791_vm13, %v4272_v19, %v1823_v10  ;;  %v1859_v29 = vsel %vm1795_vm14, %v4264_v35, %v1827_v49  ;;  %v1829_v38 = vmul.f32 0.01, %v4268_v3  ;;  %v3006_v35 = vld [vmem:[%s4732_s4 + $0x8] sm:$0xff]   ;;  %v4958_v45 = vld [vmem:[#allocation50_spill] sm:$0xff]  ;;  %v4959_v49 = vld [vmem:[#allocation49_spill] sm:$0xff] }
 0x2ae   : > { %v1891_v33 = vpack.c.bf16 %v1859_v29, %v1855_v14  ;;  %v1857_v58 = vsel %vm1793_vm15, %v4280_v55, %v1825_v42  ;;  %vm2015_vm1 = vcmask 523264   ;;  %v4946_v19 = vmov 0   ;;  %v3008_v55 = vld [vmem:[%s4732_s4 + $0x18] sm:$0xff]   ;;  %v1908_v42 = vpop.permute.xlu0 %1907 }
 0x2af   : > { %2159 = vmatprep.subr.bf16.mxu1 %v1894_v22  ;;  %v1861_v5 = vsel %vm1797_vm0, %v4268_v3, %v1829_v38  ;;  %v3007_v3 = vld [vmem:[%s4732_s4 + $0x10] sm:$0xff]   ;;  %vm2266_vm2 = vcmp.gt.f32.partialorder %v4947_v18, 0.0  ;;  %v4949_v37 = vsub.s32 0, %v4948_v25  ;;  %v4950_v34 = vsub.s32 1, %v4948_v25  ;;  %v4960_v22 = vld [vmem:[#allocation51_spill] sm:$0xff]  ;;  %v1913_v38 = vpop.permute.xlu1 %1912 }
 0x2b0   : > { %2047 = vmatpush1.bf16.msra.mxu0 %v1891_v33  ;;  %v1893_v30 = vpack.c.bf16 %v1861_v5, %v1857_v58  ;;  %v2267_v28 = vsel %vm2266_vm2, 1, %v4946_v19  ;;  %v4951_v61 = vsub.s32 2, %v4948_v25  ;;  %v4952_v47 = vsub.s32 3, %v4948_v25 }
 0x2b1   : > { %v4436_v21 = vrot.slane %v2267_v28, %v4949_v37  ;;  %v4440_v43 = vrot.slane %v2267_v28, %v4950_v34  ;;  %v4963_v34 = vld [vmem:[#allocation53_spill] sm:$0xff] }
 0x2b2   : > { %2160 = vmatpush1.bf16.msra.mxu1 %v1893_v30  ;;  %v4444_v32 = vrot.slane %v2267_v28, %v4951_v61  ;;  %v4448_v41 = vrot.slane %v2267_v28, %v4952_v47 }
 0x2b3   : > { %2766 = vmatmul.mubr.msk.bf16.vlgmr.msra.gmra.mrb[0].mxu0 %vm2015_vm1, %v3005_v56  ;;  %vm2284_vm3 = vcmp.eq.s32.totalorder %v4436_v21, 1  ;;  %vm2285_vm4 = vcmp.eq.s32.totalorder %v4440_v43, 1  ;;  %v5016_v21 = vld [vmem:[#allocation107_spill] sm:$0xff] }
 0x2b4   : > { %2082 = vmatprep.mubr.bf16.mxu0 %v4946_v19  ;;  %vm2286_vm5 = vcmp.eq.s32.totalorder %v4444_v32, 1  ;;  %vm2287_vm6 = vcmp.eq.s32.totalorder %v4448_v41, 1 }
 0x2b5   : > { %2774 = vmatmul.mubr.msk.bf16.vlgmr.msra.gmra.mrb[0].mxu1 %vm2015_vm1, %v3005_v56 }
 0x2b6   : > { %2195 = vmatprep.mubr.bf16.mxu1 %v4946_v19 }
 0x2bb   : > { %2767 = vmatmul.mubr.msk.bf16.gmra.mrb[4].mxu0 %vm2015_vm1, %v3006_v35 }
 0x2bc   : > { %2092 = vmatprep.mubr.bf16.mxu0 %v4946_v19 }
 0x2bd   : > { %2775 = vmatmul.mubr.msk.bf16.gmra.mrb[4].mxu1 %vm2015_vm1, %v3006_v35  ;;  %v4961_v35 = vld [vmem:[#allocation52_spill] sm:$0xff] }
 0x2be   : > { %2205 = vmatprep.mubr.bf16.mxu1 %v4946_v19 }
 0x2c3   : > { %2768 = vmatmul.mubr.msk.bf16.gmra.mrb[8].mxu0 %vm2015_vm1, %v3007_v3 }
 0x2c4   : > { %2102 = vmatprep.mubr.bf16.mxu0 %v4946_v19 }
 0x2c5   : > { %2776 = vmatmul.mubr.msk.bf16.gmra.mrb[8].mxu1 %vm2015_vm1, %v3007_v3 }
 0x2c6   : > { %2215 = vmatprep.mubr.bf16.mxu1 %v4946_v19 }
 0x2cb   : > { %2769 = vmatmul.mubr.msk.bf16.gmra.mrb[12].mxu0 %vm2015_vm1, %v3008_v55 }
 0x2cc   : > { %2112 = vmatprep.mubr.bf16.mxu0 %v4946_v19 }
 0x2cd   : > { %2777 = vmatmul.mubr.msk.bf16.gmra.mrb[12].mxu1 %vm2015_vm1, %v3008_v55 }
 0x2ce   : > { %2225 = vmatprep.mubr.bf16.mxu1 %v4946_v19 }
 0x2d3   : > { %2770 = vmatmul.mubr.msk.bf16.gmra.mrb[16].mxu0 %vm2015_vm1, %v3009_v8 }
 0x2d4   : > { %2122 = vmatprep.mubr.bf16.mxu0 %v4946_v19 }
 0x2d5   : > { %2778 = vmatmul.mubr.msk.bf16.gmra.mrb[16].mxu1 %vm2015_vm1, %v3009_v8 }
 0x2d6   : > { %2235 = vmatprep.mubr.bf16.mxu1 %v4946_v19 }
 0x2db   : > { %2771 = vmatmul.mubr.msk.bf16.gmra.mrb[20].mxu0 %vm2015_vm1, %v3010_v11 }
 0x2dc   : > { %2132 = vmatprep.mubr.bf16.mxu0 %v4946_v19 }
 0x2dd   : > { %2779 = vmatmul.mubr.msk.bf16.gmra.mrb[20].mxu1 %vm2015_vm1, %v3010_v11 }
 0x2de   : > { %2245 = vmatprep.mubr.bf16.mxu1 %v4946_v19 }
 0x2e3   : > { %2772 = vmatmul.mubr.msk.bf16.gmra.mrb[24].mxu0 %vm2015_vm1, %v3011_v12 }
 0x2e4   : > { %2142 = vmatprep.mubr.bf16.mxu0 %v4946_v19 }
 0x2e5   : > { %2780 = vmatmul.mubr.msk.bf16.gmra.mrb[24].mxu1 %vm2015_vm1, %v3011_v12 }
 0x2e6   : > { %2255 = vmatprep.mubr.bf16.mxu1 %v4946_v19 }
 0x2eb   : > { %2773 = vmatmul.mubr.msk.bf16.gmra.mrb[28].mxu0 %vm2015_vm1, %v3012_v59 }
 0x2ed   : > { %2781 = vmatmul.mubr.msk.bf16.gmra.mrb[28].mxu1 %vm2015_vm1, %v3012_v59  ;;  %v4962_v59 = vld [vmem:[#allocation54_spill] sm:$0xff] }
 0x386   : > { %v2074_v48 = vpop.f32.mrb[0].mxu0 }
 0x387   : > { %v2075_v1 = vadd.f32 %v2074_v48, %v1898_v9  ;;  %v2076_v15 = vpop.f32.mrb[1].mxu0 }
 0x388   : > { %v2187_v2 = vpop.f32.mrb[0].mxu1  ;;  %v2077_v20 = vadd.f32 %v2076_v15, %v1898_v9  ;;  %v2078_v0 = vpop.f32.mrb[2].mxu0  ;;  %v4965_v15 = vld [vmem:[#allocation55_spill] sm:$0xff] }
 0x389   : > { %v2288_v17 = vsel %vm2284_vm3, %v4953_v54, %v2075_v1  ;;  %v2188_v39 = vadd.f32 %v2187_v2, %v1898_v9  ;;  %v2189_v13 = vpop.f32.mrb[1].mxu1  ;;  %v2079_v27 = vadd.f32 %v2078_v0, %v1903_v23  ;;  %v2080_v50 = vpop.f32.mrb[3].mxu0 }
 0x38a   : > { %v2289_v63 = vsel %vm2285_vm4, %v4954_v36, %v2077_v20  ;;  %v2190_v7 = vadd.f32 %v2189_v13, %v1898_v9  ;;  %v2191_v62 = vpop.f32.mrb[2].mxu1  ;;  %v2081_v40 = vadd.f32 %v2080_v50, %v1903_v23  ;;  %v4964_v9 = vld [vmem:[#allocation56_spill] sm:$0xff]  ;;  %v4966_v20 = vld [vmem:[#allocation58_spill] sm:$0xff]  ;;  %v1918_v50 = vpop.permute.xlu0 %1917  ;;  %v4968_v36 = vld [vmem:[#allocation59_spill] sm:$0xff] }
 0x38b   : > { %v2290_v60 = vsel %vm2286_vm5, %v4955_v24, %v2188_v39  ;;  %v2852_v57 = vpack.c.bf16 %v2289_v63, %v2288_v17  ;;  %v2292_v26 = vsel %vm2284_vm3, %v4956_v4, %v2079_v27  ;;  %v2192_v6 = vadd.f32 %v2191_v62, %v1903_v23  ;;  %v2193_v31 = vpop.f32.mrb[3].mxu1  ;;  %v4967_v39 = vld [vmem:[#allocation57_spill] sm:$0xff]  ;;  %v1923_v62 = vpop.permute.xlu1 %1922 }
 0x38c   : > { %v2291_v16 = vsel %vm2287_vm6, %v4957_v51, %v2190_v7  ;;  %v2293_v52 = vsel %vm2285_vm4, %v4958_v45, %v2081_v40  ;;  %v2194_v46 = vadd.f32 %v2193_v31, %v1903_v23 }
 0x38d   : > { %2544 = vst [vmem:[%s3654_s15] sm:$0xff] %v2852_v57  ;;  %v2853_v10 = vpack.c.bf16 %v2291_v16, %v2290_v60  ;;  %v2294_v53 = vsel %vm2286_vm5, %v4959_v49, %v2192_v6  ;;  %v2854_v44 = vpack.c.bf16 %v2293_v52, %v2292_v26  ;;  %v4969_v6 = vld [vmem:[#allocation60_spill] sm:$0xff] }
 0x38e   : > { %v2295_v14 = vsel %vm2287_vm6, %v4960_v22, %v2194_v46  ;;  %v2084_v29 = vpop.f32.mrb[4].mxu0  ;;  %v4970_v46 = vld [vmem:[#allocation62_spill] sm:$0xff] }
 0x38f   : > { %2545 = vst [vmem:[%s3654_s15 + $0x8] sm:$0xff] %v2853_v10  ;;  %2546 = vst [vmem:[%s3654_s15 + $0x10] sm:$0xff] %v2854_v44  ;;  %v2855_v33 = vpack.c.bf16 %v2295_v14, %v2294_v53  ;;  %v2085_v58 = vadd.f32 %v2084_v29, %v1908_v42  ;;  %v2086_v5 = vpop.f32.mrb[5].mxu0  ;;  %v4972_v29 = vld [vmem:[#allocation64_spill] sm:$0xff] }
 0x390   : > { %v2197_v56 = vpop.f32.mrb[4].mxu1  ;;  %v2087_v30 = vadd.f32 %v2086_v5, %v1908_v42  ;;  %v2088_v19 = vpop.f32.mrb[6].mxu0  ;;  %v4973_v5 = vld [vmem:[#allocation63_spill] sm:$0xff] }
 0x391   : > { %2547 = vst [vmem:[%s3654_s15 + $0x18] sm:$0xff] %v2855_v33  ;;  %v2296_v3 = vsel %vm2284_vm3, %v4961_v35, %v2085_v58  ;;  %v2198_v55 = vadd.f32 %v2197_v56, %v1908_v42  ;;  %v2199_v8 = vpop.f32.mrb[5].mxu1  ;;  %v2089_v11 = vadd.f32 %v2088_v19, %v1913_v38  ;;  %v2090_v12 = vpop.f32.mrb[7].mxu0 }
 0x392   : > { %v2297_v18 = vsel %vm2285_vm4, %v4962_v59, %v2087_v30  ;;  %v2200_v28 = vadd.f32 %v2199_v8, %v1908_v42  ;;  %v2201_v25 = vpop.f32.mrb[6].mxu1  ;;  %v2091_v37 = vadd.f32 %v2090_v12, %v1913_v38  ;;  %v4971_v42 = vld [vmem:[#allocation61_spill] sm:$0xff]  ;;  %v4974_v30 = vld [vmem:[#allocation66_spill] sm:$0xff]  ;;  %v1928_v12 = vpop.permute.xlu0 %1927  ;;  %v4976_v59 = vld [vmem:[#allocation67_spill] sm:$0xff] }
 0x393   : > { %v2298_v61 = vsel %vm2286_vm5, %v4963_v34, %v2198_v55  ;;  %v2856_v47 = vpack.c.bf16 %v2297_v18, %v2296_v3  ;;  %v2300_v48 = vsel %vm2284_vm3, %v4964_v9, %v2089_v11  ;;  %v2202_v23 = vadd.f32 %v2201_v25, %v1913_v38  ;;  %v2203_v1 = vpop.f32.mrb[7].mxu1  ;;  %v4975_v55 = vld [vmem:[#allocation65_spill] sm:$0xff]  ;;  %v1933_v25 = vpop.permute.xlu1 %1932 }
 0x394   : > { %v2299_v2 = vsel %vm2287_vm6, %v4965_v15, %v2200_v28  ;;  %v2301_v0 = vsel %vm2285_vm4, %v4966_v20, %v2091_v37  ;;  %v2204_v54 = vadd.f32 %v2203_v1, %v1913_v38 }
 0x395   : > { %2548 = vst [vmem:[%s3654_s15 + $0x20] sm:$0xff] %v2856_v47  ;;  %v2857_v17 = vpack.c.bf16 %v2299_v2, %v2298_v61  ;;  %v2302_v13 = vsel %vm2286_vm5, %v4967_v39, %v2202_v23  ;;  %v2858_v27 = vpack.c.bf16 %v2301_v0, %v2300_v48  ;;  %v4977_v23 = vld [vmem:[#allocation68_spill] sm:$0xff] }
 0x396   : > { %v2303_v63 = vsel %vm2287_vm6, %v4968_v36, %v2204_v54  ;;  %v2094_v7 = vpop.f32.mrb[8].mxu0  ;;  %v4978_v54 = vld [vmem:[#allocation70_spill] sm:$0xff] }
 0x397   : > { %2549 = vst [vmem:[%s3654_s15 + $0x28] sm:$0xff] %v2857_v17  ;;  %2550 = vst [vmem:[%s3654_s15 + $0x30] sm:$0xff] %v2858_v27  ;;  %v2859_v40 = vpack.c.bf16 %v2303_v63, %v2302_v13  ;;  %v2095_v24 = vadd.f32 %v2094_v7, %v1918_v50  ;;  %v2096_v60 = vpop.f32.mrb[9].mxu0  ;;  %v4980_v7 = vld [vmem:[#allocation72_spill] sm:$0xff] }
 0x398   : > { %v2207_v57 = vpop.f32.mrb[8].mxu1  ;;  %v2097_v4 = vadd.f32 %v2096_v60, %v1918_v50  ;;  %v2098_v26 = vpop.f32.mrb[10].mxu0  ;;  %v4981_v60 = vld [vmem:[#allocation71_spill] sm:$0xff] }
 0x399   : > { %2551 = vst [vmem:[%s3654_s15 + $0x38] sm:$0xff] %v2859_v40  ;;  %v2304_v31 = vsel %vm2284_vm3, %v4969_v6, %v2095_v24  ;;  %v2208_v51 = vadd.f32 %v2207_v57, %v1918_v50  ;;  %v2209_v16 = vpop.f32.mrb[9].mxu1  ;;  %v2099_v45 = vadd.f32 %v2098_v26, %v1923_v62  ;;  %v2100_v52 = vpop.f32.mrb[11].mxu0 }
 0x39a   : > { %v2305_v10 = vsel %vm2285_vm4, %v4970_v46, %v2097_v4  ;;  %v2210_v49 = vadd.f32 %v2209_v16, %v1918_v50  ;;  %v2211_v53 = vpop.f32.mrb[10].mxu1  ;;  %v2101_v44 = vadd.f32 %v2100_v52, %v1923_v62  ;;  %v4979_v50 = vld [vmem:[#allocation69_spill] sm:$0xff]  ;;  %v4982_v4 = vld [vmem:[#allocation74_spill] sm:$0xff]  ;;  %v1938_v52 = vpop.permute.xlu0 %1937  ;;  %v4984_v46 = vld [vmem:[#allocation75_spill] sm:$0xff] }
 0x39b   : > { %v2306_v22 = vsel %vm2286_vm5, %v4971_v42, %v2208_v51  ;;  %v2860_v14 = vpack.c.bf16 %v2305_v10, %v2304_v31  ;;  %v2308_v38 = vsel %vm2284_vm3, %v4972_v29, %v2099_v45  ;;  %v2212_v33 = vadd.f32 %v2211_v53, %v1923_v62  ;;  %v2213_v58 = vpop.f32.mrb[11].mxu1  ;;  %v4983_v51 = vld [vmem:[#allocation73_spill] sm:$0xff]  ;;  %v1943_v53 = vpop.permute.xlu1 %1942 }
 0x39c   : > { %v2307_v56 = vsel %vm2287_vm6, %v4973_v5, %v2210_v49  ;;  %v2309_v19 = vsel %vm2285_vm4, %v4974_v30, %v2101_v44  ;;  %v2214_v35 = vadd.f32 %v2213_v58, %v1923_v62 }
 0x39d   : > { %2552 = vst [vmem:[%s3654_s15 + $0x40] sm:$0xff] %v2860_v14  ;;  %v2861_v3 = vpack.c.bf16 %v2307_v56, %v2306_v22  ;;  %v2310_v8 = vsel %vm2286_vm5, %v4975_v55, %v2212_v33  ;;  %v2862_v11 = vpack.c.bf16 %v2309_v19, %v2308_v38  ;;  %v4985_v33 = vld [vmem:[#allocation76_spill] sm:$0xff] }
 0x39e   : > { %v2311_v18 = vsel %vm2287_vm6, %v4976_v59, %v2214_v35  ;;  %v2104_v28 = vpop.f32.mrb[12].mxu0  ;;  %v4986_v35 = vld [vmem:[#allocation78_spill] sm:$0xff] }
 0x39f   : > { %2553 = vst [vmem:[%s3654_s15 + $0x48] sm:$0xff] %v2861_v3  ;;  %2554 = vst [vmem:[%s3654_s15 + $0x50] sm:$0xff] %v2862_v11  ;;  %v2863_v37 = vpack.c.bf16 %v2311_v18, %v2310_v8  ;;  %v2105_v34 = vadd.f32 %v2104_v28, %v1928_v12  ;;  %v2106_v61 = vpop.f32.mrb[13].mxu0  ;;  %v4988_v28 = vld [vmem:[#allocation80_spill] sm:$0xff] }
 0x3a0   : > { %v2217_v47 = vpop.f32.mrb[12].mxu1  ;;  %v2107_v9 = vadd.f32 %v2106_v61, %v1928_v12  ;;  %v2108_v48 = vpop.f32.mrb[14].mxu0  ;;  %v4989_v61 = vld [vmem:[#allocation79_spill] sm:$0xff] }
 0x3a1   : > { %2555 = vst [vmem:[%s3654_s15 + $0x58] sm:$0xff] %v2863_v37  ;;  %v2312_v1 = vsel %vm2284_vm3, %v4977_v23, %v2105_v34  ;;  %v2218_v15 = vadd.f32 %v2217_v47, %v1928_v12  ;;  %v2219_v2 = vpop.f32.mrb[13].mxu1  ;;  %v2109_v20 = vadd.f32 %v2108_v48, %v1933_v25  ;;  %v2110_v0 = vpop.f32.mrb[15].mxu0 }
 0x3a2   : > { %v2313_v17 = vsel %vm2285_vm4, %v4978_v54, %v2107_v9  ;;  %v2220_v39 = vadd.f32 %v2219_v2, %v1928_v12  ;;  %v2221_v13 = vpop.f32.mrb[14].mxu1  ;;  %v2111_v27 = vadd.f32 %v2110_v0, %v1933_v25  ;;  %v4987_v12 = vld [vmem:[#allocation77_spill] sm:$0xff]  ;;  %v4990_v9 = vld [vmem:[#allocation82_spill] sm:$0xff]  ;;  %v1948_v0 = vpop.permute.xlu0 %1947  ;;  %v4992_v54 = vld [vmem:[#allocation83_spill] sm:$0xff] }
 0x3a3   : > { %v2314_v36 = vsel %vm2286_vm5, %v4979_v50, %v2218_v15  ;;  %v2864_v63 = vpack.c.bf16 %v2313_v17, %v2312_v1  ;;  %v2316_v62 = vsel %vm2284_vm3, %v4980_v7, %v2109_v20  ;;  %v2222_v40 = vadd.f32 %v2221_v13, %v1933_v25  ;;  %v2223_v24 = vpop.f32.mrb[15].mxu1  ;;  %v4991_v15 = vld [vmem:[#allocation81_spill] sm:$0xff]  ;;  %v1953_v13 = vpop.permute.xlu1 %1952 }
 0x3a4   : > { %v2315_v57 = vsel %vm2287_vm6, %v4981_v60, %v2220_v39  ;;  %v2317_v26 = vsel %vm2285_vm4, %v4982_v4, %v2111_v27  ;;  %v2224_v6 = vadd.f32 %v2223_v24, %v1933_v25 }
 0x3a5   : > { %2556 = vst [vmem:[%s3654_s15 + $0x60] sm:$0xff] %v2864_v63  ;;  %v2865_v31 = vpack.c.bf16 %v2315_v57, %v2314_v36  ;;  %v2318_v16 = vsel %vm2286_vm5, %v4983_v51, %v2222_v40  ;;  %v2866_v45 = vpack.c.bf16 %v2317_v26, %v2316_v62  ;;  %v4993_v40 = vld [vmem:[#allocation84_spill] sm:$0xff] }
 0x3a6   : > { %v2319_v10 = vsel %vm2287_vm6, %v4984_v46, %v2224_v6  ;;  %v2114_v49 = vpop.f32.mrb[16].mxu0  ;;  %v4994_v6 = vld [vmem:[#allocation86_spill] sm:$0xff] }
 0x3a7   : > { %2557 = vst [vmem:[%s3654_s15 + $0x68] sm:$0xff] %v2865_v31  ;;  %2558 = vst [vmem:[%s3654_s15 + $0x70] sm:$0xff] %v2866_v45  ;;  %v2867_v44 = vpack.c.bf16 %v2319_v10, %v2318_v16  ;;  %v2115_v42 = vadd.f32 %v2114_v49, %v1938_v52  ;;  %v2116_v22 = vpop.f32.mrb[17].mxu0  ;;  %v4996_v49 = vld [vmem:[#allocation88_spill] sm:$0xff] }
 0x3a8   : > { %v2227_v14 = vpop.f32.mrb[16].mxu1  ;;  %v2117_v29 = vadd.f32 %v2116_v22, %v1938_v52  ;;  %v2118_v38 = vpop.f32.mrb[18].mxu0  ;;  %v4997_v22 = vld [vmem:[#allocation87_spill] sm:$0xff] }
 0x3a9   : > { %2559 = vst [vmem:[%s3654_s15 + $0x78] sm:$0xff] %v2867_v44  ;;  %v2320_v58 = vsel %vm2284_vm3, %v4985_v33, %v2115_v42  ;;  %v2228_v5 = vadd.f32 %v2227_v14, %v1938_v52  ;;  %v2229_v56 = vpop.f32.mrb[17].mxu1  ;;  %v2119_v30 = vadd.f32 %v2118_v38, %v1943_v53  ;;  %v2120_v19 = vpop.f32.mrb[19].mxu0 }
 0x3aa   : > { %v2321_v3 = vsel %vm2285_vm4, %v4986_v35, %v2117_v29  ;;  %v2230_v55 = vadd.f32 %v2229_v56, %v1938_v52  ;;  %v2231_v8 = vpop.f32.mrb[18].mxu1  ;;  %v2121_v11 = vadd.f32 %v2120_v19, %v1943_v53  ;;  %v4995_v52 = vld [vmem:[#allocation85_spill] sm:$0xff]  ;;  %v4998_v29 = vld [vmem:[#allocation90_spill] sm:$0xff]  ;;  %v1958_v19 = vpop.permute.xlu0 %1957  ;;  %v5000_v35 = vld [vmem:[#allocation91_spill] sm:$0xff] }
 0x3ab   : > { %v2322_v59 = vsel %vm2286_vm5, %v4987_v12, %v2228_v5  ;;  %v2868_v18 = vpack.c.bf16 %v2321_v3, %v2320_v58  ;;  %v2324_v25 = vsel %vm2284_vm3, %v4988_v28, %v2119_v30  ;;  %v2232_v37 = vadd.f32 %v2231_v8, %v1943_v53  ;;  %v2233_v34 = vpop.f32.mrb[19].mxu1  ;;  %v4999_v5 = vld [vmem:[#allocation89_spill] sm:$0xff]  ;;  %v1963_v8 = vpop.permute.xlu1 %1962 }
 0x3ac   : > { %v2323_v47 = vsel %vm2287_vm6, %v4989_v61, %v2230_v55  ;;  %v2325_v48 = vsel %vm2285_vm4, %v4990_v9, %v2121_v11  ;;  %v2234_v23 = vadd.f32 %v2233_v34, %v1943_v53 }
 0x3ad   : > { %2560 = vst [vmem:[%s3654_s15 + $0x80] sm:$0xff] %v2868_v18  ;;  %v2869_v1 = vpack.c.bf16 %v2323_v47, %v2322_v59  ;;  %v2326_v2 = vsel %vm2286_vm5, %v4991_v15, %v2232_v37  ;;  %v2870_v20 = vpack.c.bf16 %v2325_v48, %v2324_v25  ;;  %v5001_v37 = vld [vmem:[#allocation92_spill] sm:$0xff] }
 0x3ae   : > { %v2327_v17 = vsel %vm2287_vm6, %v4992_v54, %v2234_v23  ;;  %v2124_v39 = vpop.f32.mrb[20].mxu0  ;;  %v5002_v23 = vld [vmem:[#allocation94_spill] sm:$0xff] }
 0x3af   : > { %2561 = vst [vmem:[%s3654_s15 + $0x88] sm:$0xff] %v2869_v1  ;;  %2562 = vst [vmem:[%s3654_s15 + $0x90] sm:$0xff] %v2870_v20  ;;  %v2871_v27 = vpack.c.bf16 %v2327_v17, %v2326_v2  ;;  %v2125_v50 = vadd.f32 %v2124_v39, %v1948_v0  ;;  %v2126_v36 = vpop.f32.mrb[21].mxu0  ;;  %v5004_v39 = vld [vmem:[#allocation96_spill] sm:$0xff] }
 0x3b0   : > { %v2237_v63 = vpop.f32.mrb[20].mxu1  ;;  %v2127_v7 = vadd.f32 %v2126_v36, %v1948_v0  ;;  %v2128_v62 = vpop.f32.mrb[22].mxu0  ;;  %v5005_v36 = vld [vmem:[#allocation95_spill] sm:$0xff] }
 0x3b1   : > { %2563 = vst [vmem:[%s3654_s15 + $0x98] sm:$0xff] %v2871_v27  ;;  %v2328_v24 = vsel %vm2284_vm3, %v4993_v40, %v2125_v50  ;;  %v2238_v60 = vadd.f32 %v2237_v63, %v1948_v0  ;;  %v2239_v57 = vpop.f32.mrb[21].mxu1  ;;  %v2129_v4 = vadd.f32 %v2128_v62, %v1953_v13  ;;  %v2130_v26 = vpop.f32.mrb[23].mxu0 }
 0x3b2   : > { %v2329_v31 = vsel %vm2285_vm4, %v4994_v6, %v2127_v7  ;;  %v2240_v51 = vadd.f32 %v2239_v57, %v1948_v0  ;;  %v2241_v16 = vpop.f32.mrb[22].mxu1  ;;  %v2131_v45 = vadd.f32 %v2130_v26, %v1953_v13  ;;  %v5003_v0 = vld [vmem:[#allocation93_spill] sm:$0xff]  ;;  %v5006_v7 = vld [vmem:[#allocation98_spill] sm:$0xff]  ;;  %v1968_v26 = vpop.permute.xlu0 %1967  ;;  %v5008_v6 = vld [vmem:[#allocation99_spill] sm:$0xff] }
 0x3b3   : > { %v2330_v46 = vsel %vm2286_vm5, %v4995_v52, %v2238_v60  ;;  %v2872_v10 = vpack.c.bf16 %v2329_v31, %v2328_v24  ;;  %v2332_v53 = vsel %vm2284_vm3, %v4996_v49, %v2129_v4  ;;  %v2242_v44 = vadd.f32 %v2241_v16, %v1953_v13  ;;  %v2243_v42 = vpop.f32.mrb[23].mxu1  ;;  %v5007_v60 = vld [vmem:[#allocation97_spill] sm:$0xff]  ;;  %v1973_v16 = vpop.permute.xlu1 %1972 }
 0x3b4   : > { %v2331_v14 = vsel %vm2287_vm6, %v4997_v22, %v2240_v51  ;;  %v2333_v38 = vsel %vm2285_vm4, %v4998_v29, %v2131_v45  ;;  %v2244_v33 = vadd.f32 %v2243_v42, %v1953_v13 }
 0x3b5   : > { %2564 = vst [vmem:[%s3654_s15 + $0xa0] sm:$0xff] %v2872_v10  ;;  %v2873_v58 = vpack.c.bf16 %v2331_v14, %v2330_v46  ;;  %v2334_v56 = vsel %vm2286_vm5, %v4999_v5, %v2242_v44  ;;  %v2874_v30 = vpack.c.bf16 %v2333_v38, %v2332_v53  ;;  %v5009_v44 = vld [vmem:[#allocation100_spill] sm:$0xff] }
 0x3b6   : > { %v2335_v3 = vsel %vm2287_vm6, %v5000_v35, %v2244_v33  ;;  %v2134_v55 = vpop.f32.mrb[24].mxu0  ;;  %v5010_v33 = vld [vmem:[#allocation102_spill] sm:$0xff] }
 0x3b7   : > { %2565 = vst [vmem:[%s3654_s15 + $0xa8] sm:$0xff] %v2873_v58  ;;  %2566 = vst [vmem:[%s3654_s15 + $0xb0] sm:$0xff] %v2874_v30  ;;  %v2875_v11 = vpack.c.bf16 %v2335_v3, %v2334_v56  ;;  %v2135_v12 = vadd.f32 %v2134_v55, %v1958_v19  ;;  %v2136_v59 = vpop.f32.mrb[25].mxu0  ;;  %v5012_v55 = vld [vmem:[#allocation104_spill] sm:$0xff] }
 0x3b8   : > { %v2247_v18 = vpop.f32.mrb[24].mxu1  ;;  %v2137_v28 = vadd.f32 %v2136_v59, %v1958_v19  ;;  %v2138_v25 = vpop.f32.mrb[26].mxu0  ;;  %v5013_v59 = vld [vmem:[#allocation103_spill] sm:$0xff] }
 0x3b9   : > { %2567 = vst [vmem:[%s3654_s15 + $0xb8] sm:$0xff] %v2875_v11  ;;  %v2336_v34 = vsel %vm2284_vm3, %v5001_v37, %v2135_v12  ;;  %v2248_v61 = vadd.f32 %v2247_v18, %v1958_v19  ;;  %v2249_v47 = vpop.f32.mrb[25].mxu1  ;;  %v2139_v9 = vadd.f32 %v2138_v25, %v1963_v8  ;;  %v2140_v48 = vpop.f32.mrb[27].mxu0 }
 0x3ba   : > { %v2337_v1 = vsel %vm2285_vm4, %v5002_v23, %v2137_v28  ;;  %v2250_v15 = vadd.f32 %v2249_v47, %v1958_v19  ;;  %v2251_v2 = vpop.f32.mrb[26].mxu1  ;;  %v2141_v20 = vadd.f32 %v2140_v48, %v1963_v8  ;;  %v5011_v19 = vld [vmem:[#allocation101_spill] sm:$0xff]  ;;  %v5014_v28 = vld [vmem:[#allocation106_spill] sm:$0xff] }
 0x3bb   : > { %v2338_v54 = vsel %vm2286_vm5, %v5003_v0, %v2248_v61  ;;  %v2876_v17 = vpack.c.bf16 %v2337_v1, %v2336_v34  ;;  %v2340_v13 = vsel %vm2284_vm3, %v5004_v39, %v2139_v9  ;;  %v2252_v27 = vadd.f32 %v2251_v2, %v1963_v8  ;;  %v2253_v50 = vpop.f32.mrb[27].mxu1  ;;  %v5015_v61 = vld [vmem:[#allocation105_spill] sm:$0xff] }
 0x3bc   : > { %v2339_v63 = vsel %vm2287_vm6, %v5005_v36, %v2250_v15  ;;  %v2341_v62 = vsel %vm2285_vm4, %v5006_v7, %v2141_v20  ;;  %v2254_v40 = vadd.f32 %v2253_v50, %v1963_v8 }
 0x3bd   : > { %2568 = vst [vmem:[%s3654_s15 + $0xc0] sm:$0xff] %v2876_v17  ;;  %v2877_v24 = vpack.c.bf16 %v2339_v63, %v2338_v54  ;;  %v2342_v57 = vsel %vm2286_vm5, %v5007_v60, %v2252_v27  ;;  %v2878_v4 = vpack.c.bf16 %v2341_v62, %v2340_v13 }
 0x3be   : > { %v2343_v31 = vsel %vm2287_vm6, %v5008_v6, %v2254_v40  ;;  %v2144_v51 = vpop.f32.mrb[28].mxu0 }
 0x3bf   : > { %2569 = vst [vmem:[%s3654_s15 + $0xc8] sm:$0xff] %v2877_v24  ;;  %2570 = vst [vmem:[%s3654_s15 + $0xd0] sm:$0xff] %v2878_v4  ;;  %v2879_v45 = vpack.c.bf16 %v2343_v31, %v2342_v57  ;;  %v2145_v52 = vadd.f32 %v2144_v51, %v1968_v26  ;;  %v2146_v46 = vpop.f32.mrb[29].mxu0 }
 0x3c0   : > { %v2257_v10 = vpop.f32.mrb[28].mxu1  ;;  %v2147_v49 = vadd.f32 %v2146_v46, %v1968_v26  ;;  %v2148_v53 = vpop.f32.mrb[30].mxu0 }
 0x3c1   : > { %2571 = vst [vmem:[%s3654_s15 + $0xd8] sm:$0xff] %v2879_v45  ;;  %v2344_v42 = vsel %vm2284_vm3, %v5009_v44, %v2145_v52  ;;  %v2258_v22 = vadd.f32 %v2257_v10, %v1968_v26  ;;  %v2259_v14 = vpop.f32.mrb[29].mxu1  ;;  %v2149_v29 = vadd.f32 %v2148_v53, %v1973_v16  ;;  %v2150_v38 = vpop.f32.mrb[31].mxu0 }
 0x3c2   : > { %v2345_v58 = vsel %vm2285_vm4, %v5010_v33, %v2147_v49  ;;  %v2260_v5 = vadd.f32 %v2259_v14, %v1968_v26  ;;  %v2261_v56 = vpop.f32.mrb[30].mxu1  ;;  %v2151_v30 = vadd.f32 %v2150_v38, %v1973_v16 }
 0x3c3   : > { %v2346_v35 = vsel %vm2286_vm5, %v5011_v19, %v2258_v22  ;;  %v2880_v3 = vpack.c.bf16 %v2345_v58, %v2344_v42  ;;  %v2348_v8 = vsel %vm2284_vm3, %v5012_v55, %v2149_v29  ;;  %v2262_v11 = vadd.f32 %v2261_v56, %v1973_v16  ;;  %v2263_v12 = vpop.f32.mrb[31].mxu1 }
 0x3c4   : > { %v2347_v18 = vsel %vm2287_vm6, %v5013_v59, %v2260_v5  ;;  %v2349_v25 = vsel %vm2285_vm4, %v5014_v28, %v2151_v30  ;;  %v2264_v37 = vadd.f32 %v2263_v12, %v1973_v16 }
 0x3c5   : > { %2572 = vst [vmem:[%s3654_s15 + $0xe0] sm:$0xff] %v2880_v3  ;;  %v2881_v34 = vpack.c.bf16 %v2347_v18, %v2346_v35  ;;  %v2350_v47 = vsel %vm2286_vm5, %v5015_v61, %v2262_v11  ;;  %v2882_v9 = vpack.c.bf16 %v2349_v25, %v2348_v8 }
 0x3c6   : > { %v2351_v48 = vsel %vm2287_vm6, %v5016_v21, %v2264_v37 }
 0x3c7   : > { %2573 = vst [vmem:[%s3654_s15 + $0xe8] sm:$0xff] %v2881_v34  ;;  %2574 = vst [vmem:[%s3654_s15 + $0xf0] sm:$0xff] %v2882_v9  ;;  %v2883_v23 = vpack.c.bf16 %v2351_v48, %v2350_v47 }
 0x3c9   : > { %2575 = vst [vmem:[%s3654_s15 + $0xf8] sm:$0xff] %v2883_v23 }
 0x3ca PF: > { %s2884_s12 = sshll.u32 %s3188_s0, 8  ;;  %s2590_s18 = sshll.u32 %s3654_s15, 4  ;;  %s4685_s18 = int_to_ptr.vmem [resolvable:$true] %s2590_s18 }
 0x3cb   : > { %s4682_s16 = scalar_lea.hbm %s4734_s6, %s2884_s12  ;;  %s2577_s22 = scalar_lea.sflag [#allocation6], %s3272_s29 }
 0x3cc   : > { %s3051_s27 = scalar_lea.vmem %s4685_s18, 4096  ;;  %p5017_p9 = scmp.ne.s32.totalorder %s4802_s10, 0 }
 0x3cd   : > { %p3052_p8 = scmp.ne.s32.totalorder %s4685_s18, %s3051_s27  ;;  %s3125_s8 = smov [#allocation7]  }
 0x3ce   : > { %s3055_s13 = sshll.u32 %s3125_s8, 4  ;;  %s3056_s13 = int_to_ptr.vmem [resolvable:$false] %s3055_s13 }
 0x3cf   : > { %p3053_p0 = pnand %p3052_p8, %p5017_p9  ;;  %s3057_s0 = scalar_lea.vmem %s3056_s13, 8192 }
 0x3d0   : > { %p3058_p4 = scmp.lt.s32.totalorder %s4685_s18, %s3056_s13  ;;  %p3059_p5 = scmp.lt.s32.totalorder %s3057_s0, %s3051_s27 }
 0x3d1   : > { %p3054_p2 = pneg %p3053_p0 }
 0x3d2   : > { %p3060_p7 = por %p3059_p5, %p3058_p4 }
 0x3d4   : > { %p3061_p13 = pnand %p3060_p7, %p3054_p2 }
 0x3d6   : > { %3064 = shalt.err (!%p3061_p13)
}
 0x3d7   : > { %s3065_s15 = scalar_lea.hbm %s4682_s16, 4096  ;;  %s3069_s19 = scalar_lea.hbm %s4734_s6, 16384 }
 0x3d8   : > { %p3066_p1 = scmp.ne.s32.totalorder %s4682_s16, %s3065_s15  ;;  %p3070_p10 = scmp.lt.u32.totalorder %s4682_s16, %s4734_s6 }
 0x3d9   : > { %p3071_p11 = scmp.lt.u32.totalorder %s3069_s19, %s3065_s15  ;;  %p3073_p8 = scmp.lt.u32.totalorder %s3065_s15, %s4682_s16 }
 0x3da   : > { %p3067_p3 = pnand %p3066_p1, %p5017_p9 }
 0x3db   : > { %p3072_p12 = por %p3071_p11, %p3070_p10 }
 0x3dc   : > { %p3068_p6 = pneg %p3067_p3 }
 0x3dd   : > { %p3074_p0 = por %p3073_p8, %p3072_p12 }
 0x3df   : > { %p3075_p2 = pnand %p3074_p0, %p3068_p6 }
 0x3e1   : > { %3078 = shalt.err (!%p3075_p2)
}
 0x3e2   : > { %s3126_s12 = smov 256   ;;  %s3127_s14 = smov 1024  }
 0x3e3   : > { %s3128_s30 = smov 16  }
 0x3e4   : > { %2889 = dma.vmem_to_hbm [thread:$0]  (%p5017_p9), %s4685_s18, 4096, %s4682_s16, %s2577_s22, %s3126_s12, %s3127_s14, %s3128_s30  }
 0x3e5 PF: > { %p2900_p4 = scmp.ge.s32.totalorder %s3117_s26, 2  ;;  %s2605_s27 = sand.u32 1, %s3105_s23  }
 0x3e6   : > { %p5018_p5 = scmp.ne.s32.totalorder %s4803_s11, 0  ;;  %s2606_s8 = scalar_lea.sflag [#allocation6], %s2605_s27 }
 0x3e8   : > { %p2896_p7 = pnand %p2900_p4, %p5018_p5 }
 0x3ea   : > { %3100 = dma.done.wait (!%p2896_p7), %s2606_s8, 4096  }
 0x3eb   : > { %3102 = vsyncadd (!%p2896_p7), %s2606_s8, 4294963200  ;;  %p20_p13 = scmp.ge.s32.totalorder %s3192_s28, 6   ;;  %s5019_s23 = smov %s3109_s24 }
 0x3ec   : > { %s5020_s24 = smov %s3113_s25  ;;  %s5021_s25 = smov %s3204_s7 }
 0x3ed   : > { %s5022_s26 = smov %s3192_s28  ;;  %22 = sbr.rel (!%p20_p13) target bundleno = 7 (0x7), region = 96 }
 0x3f4   :  { %2611 = vsyncpa [#allocation5], 1 }
 0x3f5   :  { %2613 = vsyncpa [#allocation5 + $0x1], 1 }
 0x3f6   :  { %2614 = vsyncpa [#allocation6], 1 }
 0x3f7   :  { %2616 = vsyncpa [#allocation6 + $0x1], 1 }

</bundles_post_ra>
